<compile_context>
chip_gen: v7x
topology: tpu7x:2x2x1
jax: 0.10.0
libtpu: 0.0.40
codegen_flags: <defaults>
</compile_context>

<pallas_src>
import jax
import jax.numpy as jnp
from jax.experimental import pallas as pl
from jax.experimental.pallas import tpu as pltpu


def encoder_gru_kernel(x_ref, h0_ref, w_ih_ref, w_hh_ref, b_ih_ref, b_hh_ref,
                       out_ref, gi_ref):
    """Full-sequence GRU: batched input projection + serial recurrence.

    x_ref   : (T, H)   gathered embedding rows for the whole sequence
    h0_ref  : (1, H)   initial hidden state
    w_ih_ref: (H, 3H)  W_ih^T, gate order [r | z | n]
    w_hh_ref: (H, 3H)  W_hh^T, gate order [r | z | n]
    b_ih_ref: (1, 3H)  input bias
    b_hh_ref: (1, 3H)  hidden bias
    out_ref : (T, H)   per-step GRU outputs (resident, written once per step)
    gi_ref  : (T, 3H)  VMEM scratch holding the precomputed input projections
    """
    T = x_ref.shape[0]
    H = h0_ref.shape[1]

    # ---- Phase 0: batched input-side projection on the MXU (M = T). -------
    gi_ref[...] = (
        jnp.dot(x_ref[...], w_ih_ref[...], preferred_element_type=jnp.float32)
        + b_ih_ref[...]
    )

    # Loop-invariant operands, loaded once.
    w_hh = w_hh_ref[...]                      # (H, 3H)
    b_hh = b_hh_ref[...]                      # (1, 3H)

    # ---- Phase 1: serial recurrence; h carried as a fori_loop value. ------
    def step(t, h):
        gi = gi_ref[pl.ds(t, 1), :]           # (1, 3H)  precomputed gi row t
        gh = jnp.dot(h, w_hh, preferred_element_type=jnp.float32) + b_hh
        r = jax.nn.sigmoid(gi[:, 0:H] + gh[:, 0:H])
        z = jax.nn.sigmoid(gi[:, H:2 * H] + gh[:, H:2 * H])
        # torch.nn.GRU: n = tanh(gi_n + r * (h @ W_hn^T + b_hh_n))
        n = jnp.tanh(gi[:, 2 * H:3 * H] + r * gh[:, 2 * H:3 * H])
        h_new = (1.0 - z) * n + z * h         # (1, H)
        out_ref[pl.ds(t, 1), :] = h_new.astype(out_ref.dtype)
        return h_new

    h0 = h0_ref[...].astype(jnp.float32)
    # Fully unroll small sequences for LLO scheduling visibility.
    jax.lax.fori_loop(0, T, step, h0, unroll=(T <= 32))


def encoder_rnn_forward_seq(tokens, hidden, params):
    """Run EncoderRNN.forward over a whole token sequence in one pallas_call.

    tokens : int32[T] token ids
    hidden : (1, 1, H) initial hidden state
    returns (outputs (T, 1, H), hidden (1, 1, H)); outputs[t] is exactly the
    (output, hidden) the PyTorch module would return at step t.
    """
    H = hidden.shape[-1]
    T = int(tokens.shape[0])
    if T == 0:
        return (jnp.zeros((0, 1, H), jnp.float32),
                hidden.reshape(1, 1, H).astype(jnp.float32))

    toks = jnp.reshape(tokens, (T,)).astype(jnp.int32)
    # One contiguous gather XLA-side (replaces T per-token 512-byte DMAs).
    x_all = jnp.take(params["embedding"], toks, axis=0).astype(jnp.float32)
    h0 = hidden.reshape(1, H).astype(jnp.float32)

    grid_spec = pltpu.PrefetchScalarGridSpec(
        num_scalar_prefetch=0,
        grid=(1,),
        in_specs=[
            pl.BlockSpec((T, H), lambda i: (0, 0)),          # x_all
            pl.BlockSpec((1, H), lambda i: (0, 0)),          # h0
            pl.BlockSpec((H, 3 * H), lambda i: (0, 0)),      # W_ih^T
            pl.BlockSpec((H, 3 * H), lambda i: (0, 0)),      # W_hh^T
            pl.BlockSpec((1, 3 * H), lambda i: (0, 0)),      # b_ih
            pl.BlockSpec((1, 3 * H), lambda i: (0, 0)),      # b_hh
        ],
        out_specs=pl.BlockSpec((T, H), lambda i: (0, 0)),    # lane-dense slab
        scratch_shapes=[pltpu.VMEM((T, 3 * H), jnp.float32)],
    )

    outs = pl.pallas_call(
        encoder_gru_kernel,
        out_shape=jax.ShapeDtypeStruct((T, H), jnp.float32),
        grid_spec=grid_spec,
        compiler_params=pltpu.CompilerParams(
            dimension_semantics=("arbitrary",)),   # serial recurrence
    )(x_all, h0, params["w_ih_t"], params["w_hh_t"],
      params["b_ih"], params["b_hh"])

    outputs = outs.reshape(T, 1, H)
    final_hidden = outs[T - 1:T].reshape(1, 1, H)
    return outputs, final_hidden


def encoder_rnn_forward(token, hidden, params):
    """Exact single-step EncoderRNN.forward(input, hidden) semantics."""
    toks = jnp.reshape(token, (1,)).astype(jnp.int32)
    outs, hid = encoder_rnn_forward_seq(toks, hidden, params)
    H = hidden.shape[-1]
    return outs.reshape(1, 1, H), hid


# ----------------------------- reference path ------------------------------

def _reference_step(x, h, params):
    """Pure-JAX torch.nn.GRU single step (unpacked weights)."""
    H = h.shape[-1]
    gi = x @ params["w_ih_t"] + params["b_ih"]
    gh = h @ params["w_hh_t"] + params["b_hh"]
    r = jax.nn.sigmoid(gi[:, 0:H] + gh[:, 0:H])
    z = jax.nn.sigmoid(gi[:, H:2 * H] + gh[:, H:2 * H])
    n = jnp.tanh(gi[:, 2 * H:3 * H] + r * gh[:, 2 * H:3 * H])
    return (1.0 - z) * n + z * h


def reference_forward_seq(tokens, hidden, params):
    H = hidden.shape[-1]
    h = hidden.reshape(1, H).astype(jnp.float32)
    outs = []
    for t in range(int(tokens.shape[0])):
        x = params["embedding"][tokens[t]].reshape(1, H)
        h = _reference_step(x, h, params)
        outs.append(h)
    return jnp.stack(outs, axis=0).reshape(-1, 1, H), h.reshape(1, 1, H)


def init_params(key, input_size, hidden_size):
    """Synthetic params matching EncoderRNN shapes (transposed GRU weights)."""
    H = hidden_size
    k_emb, k_wih, k_whh, k_bih, k_bhh = jax.random.split(key, 5)
    scale = 1.0 / jnp.sqrt(H)
    emb = jax.random.normal(k_emb, (input_size, H), jnp.float32)
    # PyTorch GRU stores weight_ih_l0 as (3H, H); we keep transposed (H, 3H)
    # with gate ordering [r | z | n] along the 3H axis.
    w_ih_t = jax.random.uniform(k_wih, (H, 3 * H), jnp.float32, -scale, scale)
    w_hh_t = jax.random.uniform(k_whh, (H, 3 * H), jnp.float32, -scale, scale)
    b_ih = jax.random.uniform(k_bih, (1, 3 * H), jnp.float32, -scale, scale)
    b_hh = jax.random.uniform(k_bhh, (1, 3 * H), jnp.float32, -scale, scale)
    return {"embedding": emb, "w_ih_t": w_ih_t, "w_hh_t": w_hh_t,
            "b_ih": b_ih, "b_hh": b_hh}


if __name__ == "__main__":
    VOCAB = 16      # small vocab
    HIDDEN = 128    # lane-dense (multiple of 128); module default is 256
    T = 8           # small token sequence

    key = jax.random.PRNGKey(0)
    k_params, k_tok = jax.random.split(key)

    params = init_params(k_params, VOCAB, HIDDEN)
    tokens = jax.random.randint(k_tok, (T,), 0, VOCAB, jnp.int32)
    hidden0 = jnp.zeros((1, 1, HIDDEN), jnp.float32)   # initHidden()

    # Full-sequence run (batched input projection + in-kernel recurrence).
    outs, hid = encoder_rnn_forward_seq(tokens, hidden0, params)
    outs = jax.block_until_ready(outs)
    hid = jax.block_until_ready(hid)

    outs_ref, hid_ref = reference_forward_seq(tokens, hidden0, params)
    assert outs.shape == (T, 1, HIDDEN) and hid.shape == (1, 1, HIDDEN)
    assert jnp.allclose(outs, outs_ref, atol=1e-4, rtol=1e-4)
    assert jnp.allclose(hid, hid_ref, atol=1e-4, rtol=1e-4)

    # Single-step call (exact EncoderRNN.forward(input, hidden) semantics).
    out1, hid1 = encoder_rnn_forward(tokens[0], hidden0, params)
    out1 = jax.block_until_ready(out1)
    out1_ref, hid1_ref = reference_forward_seq(tokens[:1], hidden0, params)
    assert out1.shape == (1, 1, HIDDEN) and hid1.shape == (1, 1, HIDDEN)
    assert jnp.allclose(out1, out1_ref.reshape(1, 1, HIDDEN), atol=1e-4, rtol=1e-4)
    assert jnp.allclose(hid1, hid1_ref, atol=1e-4, rtol=1e-4)

    print("KERNEL_OK")
</pallas_src>

<mosaic_0001>
module attributes {stable_mosaic.version = 11 : i64} {
  func.func @encoder_gru_kernel(%arg0: i32, %arg1: memref<8x128xf32, #tpu.memory_space<vmem>>, %arg2: memref<1x128xf32, #tpu.memory_space<vmem>>, %arg3: memref<128x384xf32, #tpu.memory_space<vmem>>, %arg4: memref<128x384xf32, #tpu.memory_space<vmem>>, %arg5: memref<1x384xf32, #tpu.memory_space<vmem>>, %arg6: memref<1x384xf32, #tpu.memory_space<vmem>>, %arg7: memref<8x128xf32, #tpu.memory_space<vmem>>, %arg8: memref<8x384xf32, #tpu.memory_space<vmem>>) attributes {dimension_semantics = [#tpu.dimension_semantics<arbitrary>], iteration_bounds = array<i64: 1>, scalar_prefetch = 0 : i64, scratch_operands = 1 : i64, tpu.core_type = #tpu.core_type<tc>, window_params = [{pipeline_mode = #tpu.pipeline_mode<synchronous>, transform_indices = @transform_0, window_bounds = array<i64: 8, 128>}, {pipeline_mode = #tpu.pipeline_mode<synchronous>, transform_indices = @transform_1, window_bounds = array<i64: 1, 128>}, {pipeline_mode = #tpu.pipeline_mode<synchronous>, transform_indices = @transform_2, window_bounds = array<i64: 128, 384>}, {pipeline_mode = #tpu.pipeline_mode<synchronous>, transform_indices = @transform_3, window_bounds = array<i64: 128, 384>}, {pipeline_mode = #tpu.pipeline_mode<synchronous>, transform_indices = @transform_4, window_bounds = array<i64: 1, 384>}, {pipeline_mode = #tpu.pipeline_mode<synchronous>, transform_indices = @transform_5, window_bounds = array<i64: 1, 384>}, {pipeline_mode = #tpu.pipeline_mode<synchronous>, transform_indices = @transform_6, window_bounds = array<i64: 8, 128>}]} {
    %c0 = arith.constant 0 : index
    %c0_0 = arith.constant 0 : index
    %0 = vector.load %arg1[%c0, %c0_0] : memref<8x128xf32, #tpu.memory_space<vmem>>, vector<8x128xf32>
    %c0_1 = arith.constant 0 : index
    %c0_2 = arith.constant 0 : index
    %1 = vector.load %arg3[%c0_1, %c0_2] : memref<128x384xf32, #tpu.memory_space<vmem>>, vector<128x384xf32>
    %cst = arith.constant dense<0.000000e+00> : vector<8x384xf32>
    %2 = tpu.matmul %0, %1, %cst {dimension_numbers = #tpu.dot_dimension_numbers<[1], [0], [0], [1], [0, 0, 1, 1], [], []>} : vector<8x128xf32>, vector<128x384xf32>, vector<8x384xf32> -> vector<8x384xf32>
    %c0_3 = arith.constant 0 : index
    %c0_4 = arith.constant 0 : index
    %3 = vector.load %arg5[%c0_3, %c0_4] : memref<1x384xf32, #tpu.memory_space<vmem>>, vector<1x384xf32>
    %4 = vector.broadcast %3 : vector<1x384xf32> to vector<8x384xf32>
    %5 = arith.addf %2, %4 : vector<8x384xf32>
    %c0_5 = arith.constant 0 : index
    %c0_6 = arith.constant 0 : index
    %6 = vector.load %arg8[%c0_5, %c0_6] : memref<8x384xf32, #tpu.memory_space<vmem>>, vector<8x384xf32>
    tpu.vector_store %arg8[%c0_5, %c0_6], %5 {strides = array<i32>} : memref<8x384xf32, #tpu.memory_space<vmem>>, vector<8x384xf32>,
    %c0_7 = arith.constant 0 : index
    %c0_8 = arith.constant 0 : index
    %7 = vector.load %arg4[%c0_7, %c0_8] : memref<128x384xf32, #tpu.memory_space<vmem>>, vector<128x384xf32>
    %c0_9 = arith.constant 0 : index
    %c0_10 = arith.constant 0 : index
    %8 = vector.load %arg6[%c0_9, %c0_10] : memref<1x384xf32, #tpu.memory_space<vmem>>, vector<1x384xf32>
    %c0_11 = arith.constant 0 : index
    %c0_12 = arith.constant 0 : index
    %9 = vector.load %arg2[%c0_11, %c0_12] : memref<1x128xf32, #tpu.memory_space<vmem>>, vector<1x128xf32>
    %c0_i32 = arith.constant 0 : i32
    %10 = arith.index_cast %c0_i32 : i32 to index
    %c0_13 = arith.constant 0 : index
    %11 = vector.load %arg8[%10, %c0_13] : memref<8x384xf32, #tpu.memory_space<vmem>>, vector<1x384xf32>
    %cst_14 = arith.constant dense<0.000000e+00> : vector<1x384xf32>
    %12 = tpu.matmul %9, %7, %cst_14 {dimension_numbers = #tpu.dot_dimension_numbers<[1], [0], [0], [1], [0, 0, 1, 1], [], []>} : vector<1x128xf32>, vector<128x384xf32>, vector<1x384xf32> -> vector<1x384xf32>
    %13 = arith.addf %12, %8 : vector<1x384xf32>
    %14 = vector.extract_strided_slice %11 {offsets = [0, 0], sizes = [1, 128], strides = [1, 1]} : vector<1x384xf32> to vector<1x128xf32>
    %15 = vector.extract_strided_slice %13 {offsets = [0, 0], sizes = [1, 128], strides = [1, 1]} : vector<1x384xf32> to vector<1x128xf32>
    %16 = arith.addf %14, %15 : vector<1x128xf32>
    %17 = arith.negf %16 : vector<1x128xf32>
    %18 = math.exp %17 : vector<1x128xf32>
    %cst_15 = arith.constant 1.000000e+00 : f32
    %19 = vector.broadcast %cst_15 : f32 to vector<1x128xf32>
    %20 = arith.addf %19, %18 : vector<1x128xf32>
    %21 = arith.divf %19, %20 : vector<1x128xf32>
    %22 = vector.extract_strided_slice %11 {offsets = [0, 128], sizes = [1, 128], strides = [1, 1]} : vector<1x384xf32> to vector<1x128xf32>
    %23 = vector.extract_strided_slice %13 {offsets = [0, 128], sizes = [1, 128], strides = [1, 1]} : vector<1x384xf32> to vector<1x128xf32>
    %24 = arith.addf %22, %23 : vector<1x128xf32>
    %25 = arith.negf %24 : vector<1x128xf32>
    %26 = math.exp %25 : vector<1x128xf32>
    %cst_16 = arith.constant 1.000000e+00 : f32
    %27 = vector.broadcast %cst_16 : f32 to vector<1x128xf32>
    %28 = arith.addf %27, %26 : vector<1x128xf32>
    %29 = arith.divf %27, %28 : vector<1x128xf32>
    %30 = vector.extract_strided_slice %11 {offsets = [0, 256], sizes = [1, 128], strides = [1, 1]} : vector<1x384xf32> to vector<1x128xf32>
    %31 = vector.extract_strided_slice %13 {offsets = [0, 256], sizes = [1, 128], strides = [1, 1]} : vector<1x384xf32> to vector<1x128xf32>
    %32 = arith.mulf %21, %31 : vector<1x128xf32>
    %33 = arith.addf %30, %32 : vector<1x128xf32>
    %34 = math.tanh %33 : vector<1x128xf32>
    %cst_17 = arith.constant 1.000000e+00 : f32
    %35 = vector.broadcast %cst_17 : f32 to vector<1x128xf32>
    %36 = arith.subf %35, %29 : vector<1x128xf32>
    %37 = arith.mulf %36, %34 : vector<1x128xf32>
    %38 = arith.mulf %29, %9 : vector<1x128xf32>
    %39 = arith.addf %37, %38 : vector<1x128xf32>
    %40 = arith.index_cast %c0_i32 : i32 to index
    %c0_18 = arith.constant 0 : index
    %41 = vector.load %arg7[%40, %c0_18] : memref<8x128xf32, #tpu.memory_space<vmem>>, vector<1x128xf32>
    tpu.vector_store %arg7[%40, %c0_18], %39 {strides = array<i32>} : memref<8x128xf32, #tpu.memory_space<vmem>>, vector<1x128xf32>,
    %c1_i32 = arith.constant 1 : i32
    %42 = arith.index_cast %c1_i32 : i32 to index
    %c0_19 = arith.constant 0 : index
    %43 = vector.load %arg8[%42, %c0_19] : memref<8x384xf32, #tpu.memory_space<vmem>>, vector<1x384xf32>
    %cst_20 = arith.constant dense<0.000000e+00> : vector<1x384xf32>
    %44 = tpu.matmul %39, %7, %cst_20 {dimension_numbers = #tpu.dot_dimension_numbers<[1], [0], [0], [1], [0, 0, 1, 1], [], []>} : vector<1x128xf32>, vector<128x384xf32>, vector<1x384xf32> -> vector<1x384xf32>
    %45 = arith.addf %44, %8 : vector<1x384xf32>
    %46 = vector.extract_strided_slice %43 {offsets = [0, 0], sizes = [1, 128], strides = [1, 1]} : vector<1x384xf32> to vector<1x128xf32>
    %47 = vector.extract_strided_slice %45 {offsets = [0, 0], sizes = [1, 128], strides = [1, 1]} : vector<1x384xf32> to vector<1x128xf32>
    %48 = arith.addf %46, %47 : vector<1x128xf32>
    %49 = arith.negf %48 : vector<1x128xf32>
    %50 = math.exp %49 : vector<1x128xf32>
    %cst_21 = arith.constant 1.000000e+00 : f32
    %51 = vector.broadcast %cst_21 : f32 to vector<1x128xf32>
    %52 = arith.addf %51, %50 : vector<1x128xf32>
    %53 = arith.divf %51, %52 : vector<1x128xf32>
    %54 = vector.extract_strided_slice %43 {offsets = [0, 128], sizes = [1, 128], strides = [1, 1]} : vector<1x384xf32> to vector<1x128xf32>
    %55 = vector.extract_strided_slice %45 {offsets = [0, 128], sizes = [1, 128], strides = [1, 1]} : vector<1x384xf32> to vector<1x128xf32>
    %56 = arith.addf %54, %55 : vector<1x128xf32>
    %57 = arith.negf %56 : vector<1x128xf32>
    %58 = math.exp %57 : vector<1x128xf32>
    %cst_22 = arith.constant 1.000000e+00 : f32
    %59 = vector.broadcast %cst_22 : f32 to vector<1x128xf32>
    %60 = arith.addf %59, %58 : vector<1x128xf32>
    %61 = arith.divf %59, %60 : vector<1x128xf32>
    %62 = vector.extract_strided_slice %43 {offsets = [0, 256], sizes = [1, 128], strides = [1, 1]} : vector<1x384xf32> to vector<1x128xf32>
    %63 = vector.extract_strided_slice %45 {offsets = [0, 256], sizes = [1, 128], strides = [1, 1]} : vector<1x384xf32> to vector<1x128xf32>
    %64 = arith.mulf %53, %63 : vector<1x128xf32>
    %65 = arith.addf %62, %64 : vector<1x128xf32>
    %66 = math.tanh %65 : vector<1x128xf32>
    %cst_23 = arith.constant 1.000000e+00 : f32
    %67 = vector.broadcast %cst_23 : f32 to vector<1x128xf32>
    %68 = arith.subf %67, %61 : vector<1x128xf32>
    %69 = arith.mulf %68, %66 : vector<1x128xf32>
    %70 = arith.mulf %61, %39 : vector<1x128xf32>
    %71 = arith.addf %69, %70 : vector<1x128xf32>
    %72 = arith.index_cast %c1_i32 : i32 to index
    %c0_24 = arith.constant 0 : index
    %73 = vector.load %arg7[%72, %c0_24] : memref<8x128xf32, #tpu.memory_space<vmem>>, vector<1x128xf32>
    tpu.vector_store %arg7[%72, %c0_24], %71 {strides = array<i32>} : memref<8x128xf32, #tpu.memory_space<vmem>>, vector<1x128xf32>,
    %c2_i32 = arith.constant 2 : i32
    %74 = arith.index_cast %c2_i32 : i32 to index
    %c0_25 = arith.constant 0 : index
    %75 = vector.load %arg8[%74, %c0_25] : memref<8x384xf32, #tpu.memory_space<vmem>>, vector<1x384xf32>
    %cst_26 = arith.constant dense<0.000000e+00> : vector<1x384xf32>
    %76 = tpu.matmul %71, %7, %cst_26 {dimension_numbers = #tpu.dot_dimension_numbers<[1], [0], [0], [1], [0, 0, 1, 1], [], []>} : vector<1x128xf32>, vector<128x384xf32>, vector<1x384xf32> -> vector<1x384xf32>
    %77 = arith.addf %76, %8 : vector<1x384xf32>
    %78 = vector.extract_strided_slice %75 {offsets = [0, 0], sizes = [1, 128], strides = [1, 1]} : vector<1x384xf32> to vector<1x128xf32>
    %79 = vector.extract_strided_slice %77 {offsets = [0, 0], sizes = [1, 128], strides = [1, 1]} : vector<1x384xf32> to vector<1x128xf32>
    %80 = arith.addf %78, %79 : vector<1x128xf32>
    %81 = arith.negf %80 : vector<1x128xf32>
    %82 = math.exp %81 : vector<1x128xf32>
    %cst_27 = arith.constant 1.000000e+00 : f32
    %83 = vector.broadcast %cst_27 : f32 to vector<1x128xf32>
    %84 = arith.addf %83, %82 : vector<1x128xf32>
    %85 = arith.divf %83, %84 : vector<1x128xf32>
    %86 = vector.extract_strided_slice %75 {offsets = [0, 128], sizes = [1, 128], strides = [1, 1]} : vector<1x384xf32> to vector<1x128xf32>
    %87 = vector.extract_strided_slice %77 {offsets = [0, 128], sizes = [1, 128], strides = [1, 1]} : vector<1x384xf32> to vector<1x128xf32>
    %88 = arith.addf %86, %87 : vector<1x128xf32>
    %89 = arith.negf %88 : vector<1x128xf32>
    %90 = math.exp %89 : vector<1x128xf32>
    %cst_28 = arith.constant 1.000000e+00 : f32
    %91 = vector.broadcast %cst_28 : f32 to vector<1x128xf32>
    %92 = arith.addf %91, %90 : vector<1x128xf32>
    %93 = arith.divf %91, %92 : vector<1x128xf32>
    %94 = vector.extract_strided_slice %75 {offsets = [0, 256], sizes = [1, 128], strides = [1, 1]} : vector<1x384xf32> to vector<1x128xf32>
    %95 = vector.extract_strided_slice %77 {offsets = [0, 256], sizes = [1, 128], strides = [1, 1]} : vector<1x384xf32> to vector<1x128xf32>
    %96 = arith.mulf %85, %95 : vector<1x128xf32>
    %97 = arith.addf %94, %96 : vector<1x128xf32>
    %98 = math.tanh %97 : vector<1x128xf32>
    %cst_29 = arith.constant 1.000000e+00 : f32
    %99 = vector.broadcast %cst_29 : f32 to vector<1x128xf32>
    %100 = arith.subf %99, %93 : vector<1x128xf32>
    %101 = arith.mulf %100, %98 : vector<1x128xf32>
    %102 = arith.mulf %93, %71 : vector<1x128xf32>
    %103 = arith.addf %101, %102 : vector<1x128xf32>
    %104 = arith.index_cast %c2_i32 : i32 to index
    %c0_30 = arith.constant 0 : index
    %105 = vector.load %arg7[%104, %c0_30] : memref<8x128xf32, #tpu.memory_space<vmem>>, vector<1x128xf32>
    tpu.vector_store %arg7[%104, %c0_30], %103 {strides = array<i32>} : memref<8x128xf32, #tpu.memory_space<vmem>>, vector<1x128xf32>,
    %c3_i32 = arith.constant 3 : i32
    %106 = arith.index_cast %c3_i32 : i32 to index
    %c0_31 = arith.constant 0 : index
    %107 = vector.load %arg8[%106, %c0_31] : memref<8x384xf32, #tpu.memory_space<vmem>>, vector<1x384xf32>
    %cst_32 = arith.constant dense<0.000000e+00> : vector<1x384xf32>
    %108 = tpu.matmul %103, %7, %cst_32 {dimension_numbers = #tpu.dot_dimension_numbers<[1], [0], [0], [1], [0, 0, 1, 1], [], []>} : vector<1x128xf32>, vector<128x384xf32>, vector<1x384xf32> -> vector<1x384xf32>
    %109 = arith.addf %108, %8 : vector<1x384xf32>
    %110 = vector.extract_strided_slice %107 {offsets = [0, 0], sizes = [1, 128], strides = [1, 1]} : vector<1x384xf32> to vector<1x128xf32>
    %111 = vector.extract_strided_slice %109 {offsets = [0, 0], sizes = [1, 128], strides = [1, 1]} : vector<1x384xf32> to vector<1x128xf32>
    %112 = arith.addf %110, %111 : vector<1x128xf32>
    %113 = arith.negf %112 : vector<1x128xf32>
    %114 = math.exp %113 : vector<1x128xf32>
    %cst_33 = arith.constant 1.000000e+00 : f32
    %115 = vector.broadcast %cst_33 : f32 to vector<1x128xf32>
    %116 = arith.addf %115, %114 : vector<1x128xf32>
    %117 = arith.divf %115, %116 : vector<1x128xf32>
    %118 = vector.extract_strided_slice %107 {offsets = [0, 128], sizes = [1, 128], strides = [1, 1]} : vector<1x384xf32> to vector<1x128xf32>
    %119 = vector.extract_strided_slice %109 {offsets = [0, 128], sizes = [1, 128], strides = [1, 1]} : vector<1x384xf32> to vector<1x128xf32>
    %120 = arith.addf %118, %119 : vector<1x128xf32>
    %121 = arith.negf %120 : vector<1x128xf32>
    %122 = math.exp %121 : vector<1x128xf32>
    %cst_34 = arith.constant 1.000000e+00 : f32
    %123 = vector.broadcast %cst_34 : f32 to vector<1x128xf32>
    %124 = arith.addf %123, %122 : vector<1x128xf32>
    %125 = arith.divf %123, %124 : vector<1x128xf32>
    %126 = vector.extract_strided_slice %107 {offsets = [0, 256], sizes = [1, 128], strides = [1, 1]} : vector<1x384xf32> to vector<1x128xf32>
    %127 = vector.extract_strided_slice %109 {offsets = [0, 256], sizes = [1, 128], strides = [1, 1]} : vector<1x384xf32> to vector<1x128xf32>
    %128 = arith.mulf %117, %127 : vector<1x128xf32>
    %129 = arith.addf %126, %128 : vector<1x128xf32>
    %130 = math.tanh %129 : vector<1x128xf32>
    %cst_35 = arith.constant 1.000000e+00 : f32
    %131 = vector.broadcast %cst_35 : f32 to vector<1x128xf32>
    %132 = arith.subf %131, %125 : vector<1x128xf32>
    %133 = arith.mulf %132, %130 : vector<1x128xf32>
    %134 = arith.mulf %125, %103 : vector<1x128xf32>
    %135 = arith.addf %133, %134 : vector<1x128xf32>
    %136 = arith.index_cast %c3_i32 : i32 to index
    %c0_36 = arith.constant 0 : index
    %137 = vector.load %arg7[%136, %c0_36] : memref<8x128xf32, #tpu.memory_space<vmem>>, vector<1x128xf32>
    tpu.vector_store %arg7[%136, %c0_36], %135 {strides = array<i32>} : memref<8x128xf32, #tpu.memory_space<vmem>>, vector<1x128xf32>,
    %c4_i32 = arith.constant 4 : i32
    %138 = arith.index_cast %c4_i32 : i32 to index
    %c0_37 = arith.constant 0 : index
    %139 = vector.load %arg8[%138, %c0_37] : memref<8x384xf32, #tpu.memory_space<vmem>>, vector<1x384xf32>
    %cst_38 = arith.constant dense<0.000000e+00> : vector<1x384xf32>
    %140 = tpu.matmul %135, %7, %cst_38 {dimension_numbers = #tpu.dot_dimension_numbers<[1], [0], [0], [1], [0, 0, 1, 1], [], []>} : vector<1x128xf32>, vector<128x384xf32>, vector<1x384xf32> -> vector<1x384xf32>
    %141 = arith.addf %140, %8 : vector<1x384xf32>
    %142 = vector.extract_strided_slice %139 {offsets = [0, 0], sizes = [1, 128], strides = [1, 1]} : vector<1x384xf32> to vector<1x128xf32>
    %143 = vector.extract_strided_slice %141 {offsets = [0, 0], sizes = [1, 128], strides = [1, 1]} : vector<1x384xf32> to vector<1x128xf32>
    %144 = arith.addf %142, %143 : vector<1x128xf32>
    %145 = arith.negf %144 : vector<1x128xf32>
    %146 = math.exp %145 : vector<1x128xf32>
    %cst_39 = arith.constant 1.000000e+00 : f32
    %147 = vector.broadcast %cst_39 : f32 to vector<1x128xf32>
    %148 = arith.addf %147, %146 : vector<1x128xf32>
    %149 = arith.divf %147, %148 : vector<1x128xf32>
    %150 = vector.extract_strided_slice %139 {offsets = [0, 128], sizes = [1, 128], strides = [1, 1]} : vector<1x384xf32> to vector<1x128xf32>
    %151 = vector.extract_strided_slice %141 {offsets = [0, 128], sizes = [1, 128], strides = [1, 1]} : vector<1x384xf32> to vector<1x128xf32>
    %152 = arith.addf %150, %151 : vector<1x128xf32>
    %153 = arith.negf %152 : vector<1x128xf32>
    %154 = math.exp %153 : vector<1x128xf32>
    %cst_40 = arith.constant 1.000000e+00 : f32
    %155 = vector.broadcast %cst_40 : f32 to vector<1x128xf32>
    %156 = arith.addf %155, %154 : vector<1x128xf32>
    %157 = arith.divf %155, %156 : vector<1x128xf32>
    %158 = vector.extract_strided_slice %139 {offsets = [0, 256], sizes = [1, 128], strides = [1, 1]} : vector<1x384xf32> to vector<1x128xf32>
    %159 = vector.extract_strided_slice %141 {offsets = [0, 256], sizes = [1, 128], strides = [1, 1]} : vector<1x384xf32> to vector<1x128xf32>
    %160 = arith.mulf %149, %159 : vector<1x128xf32>
    %161 = arith.addf %158, %160 : vector<1x128xf32>
    %162 = math.tanh %161 : vector<1x128xf32>
    %cst_41 = arith.constant 1.000000e+00 : f32
    %163 = vector.broadcast %cst_41 : f32 to vector<1x128xf32>
    %164 = arith.subf %163, %157 : vector<1x128xf32>
    %165 = arith.mulf %164, %162 : vector<1x128xf32>
    %166 = arith.mulf %157, %135 : vector<1x128xf32>
    %167 = arith.addf %165, %166 : vector<1x128xf32>
    %168 = arith.index_cast %c4_i32 : i32 to index
    %c0_42 = arith.constant 0 : index
    %169 = vector.load %arg7[%168, %c0_42] : memref<8x128xf32, #tpu.memory_space<vmem>>, vector<1x128xf32>
    tpu.vector_store %arg7[%168, %c0_42], %167 {strides = array<i32>} : memref<8x128xf32, #tpu.memory_space<vmem>>, vector<1x128xf32>,
    %c5_i32 = arith.constant 5 : i32
    %170 = arith.index_cast %c5_i32 : i32 to index
    %c0_43 = arith.constant 0 : index
    %171 = vector.load %arg8[%170, %c0_43] : memref<8x384xf32, #tpu.memory_space<vmem>>, vector<1x384xf32>
    %cst_44 = arith.constant dense<0.000000e+00> : vector<1x384xf32>
    %172 = tpu.matmul %167, %7, %cst_44 {dimension_numbers = #tpu.dot_dimension_numbers<[1], [0], [0], [1], [0, 0, 1, 1], [], []>} : vector<1x128xf32>, vector<128x384xf32>, vector<1x384xf32> -> vector<1x384xf32>
    %173 = arith.addf %172, %8 : vector<1x384xf32>
    %174 = vector.extract_strided_slice %171 {offsets = [0, 0], sizes = [1, 128], strides = [1, 1]} : vector<1x384xf32> to vector<1x128xf32>
    %175 = vector.extract_strided_slice %173 {offsets = [0, 0], sizes = [1, 128], strides = [1, 1]} : vector<1x384xf32> to vector<1x128xf32>
    %176 = arith.addf %174, %175 : vector<1x128xf32>
    %177 = arith.negf %176 : vector<1x128xf32>
    %178 = math.exp %177 : vector<1x128xf32>
    %cst_45 = arith.constant 1.000000e+00 : f32
    %179 = vector.broadcast %cst_45 : f32 to vector<1x128xf32>
    %180 = arith.addf %179, %178 : vector<1x128xf32>
    %181 = arith.divf %179, %180 : vector<1x128xf32>
    %182 = vector.extract_strided_slice %171 {offsets = [0, 128], sizes = [1, 128], strides = [1, 1]} : vector<1x384xf32> to vector<1x128xf32>
    %183 = vector.extract_strided_slice %173 {offsets = [0, 128], sizes = [1, 128], strides = [1, 1]} : vector<1x384xf32> to vector<1x128xf32>
    %184 = arith.addf %182, %183 : vector<1x128xf32>
    %185 = arith.negf %184 : vector<1x128xf32>
    %186 = math.exp %185 : vector<1x128xf32>
    %cst_46 = arith.constant 1.000000e+00 : f32
    %187 = vector.broadcast %cst_46 : f32 to vector<1x128xf32>
    %188 = arith.addf %187, %186 : vector<1x128xf32>
    %189 = arith.divf %187, %188 : vector<1x128xf32>
    %190 = vector.extract_strided_slice %171 {offsets = [0, 256], sizes = [1, 128], strides = [1, 1]} : vector<1x384xf32> to vector<1x128xf32>
    %191 = vector.extract_strided_slice %173 {offsets = [0, 256], sizes = [1, 128], strides = [1, 1]} : vector<1x384xf32> to vector<1x128xf32>
    %192 = arith.mulf %181, %191 : vector<1x128xf32>
    %193 = arith.addf %190, %192 : vector<1x128xf32>
    %194 = math.tanh %193 : vector<1x128xf32>
    %cst_47 = arith.constant 1.000000e+00 : f32
    %195 = vector.broadcast %cst_47 : f32 to vector<1x128xf32>
    %196 = arith.subf %195, %189 : vector<1x128xf32>
    %197 = arith.mulf %196, %194 : vector<1x128xf32>
    %198 = arith.mulf %189, %167 : vector<1x128xf32>
    %199 = arith.addf %197, %198 : vector<1x128xf32>
    %200 = arith.index_cast %c5_i32 : i32 to index
    %c0_48 = arith.constant 0 : index
    %201 = vector.load %arg7[%200, %c0_48] : memref<8x128xf32, #tpu.memory_space<vmem>>, vector<1x128xf32>
    tpu.vector_store %arg7[%200, %c0_48], %199 {strides = array<i32>} : memref<8x128xf32, #tpu.memory_space<vmem>>, vector<1x128xf32>,
    %c6_i32 = arith.constant 6 : i32
    %202 = arith.index_cast %c6_i32 : i32 to index
    %c0_49 = arith.constant 0 : index
    %203 = vector.load %arg8[%202, %c0_49] : memref<8x384xf32, #tpu.memory_space<vmem>>, vector<1x384xf32>
    %cst_50 = arith.constant dense<0.000000e+00> : vector<1x384xf32>
    %204 = tpu.matmul %199, %7, %cst_50 {dimension_numbers = #tpu.dot_dimension_numbers<[1], [0], [0], [1], [0, 0, 1, 1], [], []>} : vector<1x128xf32>, vector<128x384xf32>, vector<1x384xf32> -> vector<1x384xf32>
    %205 = arith.addf %204, %8 : vector<1x384xf32>
    %206 = vector.extract_strided_slice %203 {offsets = [0, 0], sizes = [1, 128], strides = [1, 1]} : vector<1x384xf32> to vector<1x128xf32>
    %207 = vector.extract_strided_slice %205 {offsets = [0, 0], sizes = [1, 128], strides = [1, 1]} : vector<1x384xf32> to vector<1x128xf32>
    %208 = arith.addf %206, %207 : vector<1x128xf32>
    %209 = arith.negf %208 : vector<1x128xf32>
    %210 = math.exp %209 : vector<1x128xf32>
    %cst_51 = arith.constant 1.000000e+00 : f32
    %211 = vector.broadcast %cst_51 : f32 to vector<1x128xf32>
    %212 = arith.addf %211, %210 : vector<1x128xf32>
    %213 = arith.divf %211, %212 : vector<1x128xf32>
    %214 = vector.extract_strided_slice %203 {offsets = [0, 128], sizes = [1, 128], strides = [1, 1]} : vector<1x384xf32> to vector<1x128xf32>
    %215 = vector.extract_strided_slice %205 {offsets = [0, 128], sizes = [1, 128], strides = [1, 1]} : vector<1x384xf32> to vector<1x128xf32>
    %216 = arith.addf %214, %215 : vector<1x128xf32>
    %217 = arith.negf %216 : vector<1x128xf32>
    %218 = math.exp %217 : vector<1x128xf32>
    %cst_52 = arith.constant 1.000000e+00 : f32
    %219 = vector.broadcast %cst_52 : f32 to vector<1x128xf32>
    %220 = arith.addf %219, %218 : vector<1x128xf32>
    %221 = arith.divf %219, %220 : vector<1x128xf32>
    %222 = vector.extract_strided_slice %203 {offsets = [0, 256], sizes = [1, 128], strides = [1, 1]} : vector<1x384xf32> to vector<1x128xf32>
    %223 = vector.extract_strided_slice %205 {offsets = [0, 256], sizes = [1, 128], strides = [1, 1]} : vector<1x384xf32> to vector<1x128xf32>
    %224 = arith.mulf %213, %223 : vector<1x128xf32>
    %225 = arith.addf %222, %224 : vector<1x128xf32>
    %226 = math.tanh %225 : vector<1x128xf32>
    %cst_53 = arith.constant 1.000000e+00 : f32
    %227 = vector.broadcast %cst_53 : f32 to vector<1x128xf32>
    %228 = arith.subf %227, %221 : vector<1x128xf32>
    %229 = arith.mulf %228, %226 : vector<1x128xf32>
    %230 = arith.mulf %221, %199 : vector<1x128xf32>
    %231 = arith.addf %229, %230 : vector<1x128xf32>
    %232 = arith.index_cast %c6_i32 : i32 to index
    %c0_54 = arith.constant 0 : index
    %233 = vector.load %arg7[%232, %c0_54] : memref<8x128xf32, #tpu.memory_space<vmem>>, vector<1x128xf32>
    tpu.vector_store %arg7[%232, %c0_54], %231 {strides = array<i32>} : memref<8x128xf32, #tpu.memory_space<vmem>>, vector<1x128xf32>,
    %c7_i32 = arith.constant 7 : i32
    %234 = arith.index_cast %c7_i32 : i32 to index
    %c0_55 = arith.constant 0 : index
    %235 = vector.load %arg8[%234, %c0_55] : memref<8x384xf32, #tpu.memory_space<vmem>>, vector<1x384xf32>
    %cst_56 = arith.constant dense<0.000000e+00> : vector<1x384xf32>
    %236 = tpu.matmul %231, %7, %cst_56 {dimension_numbers = #tpu.dot_dimension_numbers<[1], [0], [0], [1], [0, 0, 1, 1], [], []>} : vector<1x128xf32>, vector<128x384xf32>, vector<1x384xf32> -> vector<1x384xf32>
    %237 = arith.addf %236, %8 : vector<1x384xf32>
    %238 = vector.extract_strided_slice %235 {offsets = [0, 0], sizes = [1, 128], strides = [1, 1]} : vector<1x384xf32> to vector<1x128xf32>
    %239 = vector.extract_strided_slice %237 {offsets = [0, 0], sizes = [1, 128], strides = [1, 1]} : vector<1x384xf32> to vector<1x128xf32>
    %240 = arith.addf %238, %239 : vector<1x128xf32>
    %241 = arith.negf %240 : vector<1x128xf32>
    %242 = math.exp %241 : vector<1x128xf32>
    %cst_57 = arith.constant 1.000000e+00 : f32
    %243 = vector.broadcast %cst_57 : f32 to vector<1x128xf32>
    %244 = arith.addf %243, %242 : vector<1x128xf32>
    %245 = arith.divf %243, %244 : vector<1x128xf32>
    %246 = vector.extract_strided_slice %235 {offsets = [0, 128], sizes = [1, 128], strides = [1, 1]} : vector<1x384xf32> to vector<1x128xf32>
    %247 = vector.extract_strided_slice %237 {offsets = [0, 128], sizes = [1, 128], strides = [1, 1]} : vector<1x384xf32> to vector<1x128xf32>
    %248 = arith.addf %246, %247 : vector<1x128xf32>
    %249 = arith.negf %248 : vector<1x128xf32>
    %250 = math.exp %249 : vector<1x128xf32>
    %cst_58 = arith.constant 1.000000e+00 : f32
    %251 = vector.broadcast %cst_58 : f32 to vector<1x128xf32>
    %252 = arith.addf %251, %250 : vector<1x128xf32>
    %253 = arith.divf %251, %252 : vector<1x128xf32>
    %254 = vector.extract_strided_slice %235 {offsets = [0, 256], sizes = [1, 128], strides = [1, 1]} : vector<1x384xf32> to vector<1x128xf32>
    %255 = vector.extract_strided_slice %237 {offsets = [0, 256], sizes = [1, 128], strides = [1, 1]} : vector<1x384xf32> to vector<1x128xf32>
    %256 = arith.mulf %245, %255 : vector<1x128xf32>
    %257 = arith.addf %254, %256 : vector<1x128xf32>
    %258 = math.tanh %257 : vector<1x128xf32>
    %cst_59 = arith.constant 1.000000e+00 : f32
    %259 = vector.broadcast %cst_59 : f32 to vector<1x128xf32>
    %260 = arith.subf %259, %253 : vector<1x128xf32>
    %261 = arith.mulf %260, %258 : vector<1x128xf32>
    %262 = arith.mulf %253, %231 : vector<1x128xf32>
    %263 = arith.addf %261, %262 : vector<1x128xf32>
    %264 = arith.index_cast %c7_i32 : i32 to index
    %c0_60 = arith.constant 0 : index
    %265 = vector.load %arg7[%264, %c0_60] : memref<8x128xf32, #tpu.memory_space<vmem>>, vector<1x128xf32>
    tpu.vector_store %arg7[%264, %c0_60], %263 {strides = array<i32>} : memref<8x128xf32, #tpu.memory_space<vmem>>, vector<1x128xf32>,
    %c8_i32 = arith.constant 8 : i32
    return
  }
  func.func @transform_0(%arg0: i32) -> (i32, i32) {
    %c0_i32 = arith.constant 0 : i32
    %c0_i32_0 = arith.constant 0 : i32
    %c0_i32_1 = arith.constant 0 : i32
    return %c0_i32, %c0_i32_0 : i32, i32
  }
  func.func @transform_1(%arg0: i32) -> (i32, i32) {
    %c0_i32 = arith.constant 0 : i32
    %c0_i32_0 = arith.constant 0 : i32
    %c0_i32_1 = arith.constant 0 : i32
    return %c0_i32, %c0_i32_0 : i32, i32
  }
  func.func @transform_2(%arg0: i32) -> (i32, i32) {
    %c0_i32 = arith.constant 0 : i32
    %c0_i32_0 = arith.constant 0 : i32
    %c0_i32_1 = arith.constant 0 : i32
    return %c0_i32, %c0_i32_0 : i32, i32
  }
  func.func @transform_3(%arg0: i32) -> (i32, i32) {
    %c0_i32 = arith.constant 0 : i32
    %c0_i32_0 = arith.constant 0 : i32
    %c0_i32_1 = arith.constant 0 : i32
    return %c0_i32, %c0_i32_0 : i32, i32
  }
  func.func @transform_4(%arg0: i32) -> (i32, i32) {
    %c0_i32 = arith.constant 0 : i32
    %c0_i32_0 = arith.constant 0 : i32
    %c0_i32_1 = arith.constant 0 : i32
    return %c0_i32, %c0_i32_0 : i32, i32
  }
  func.func @transform_5(%arg0: i32) -> (i32, i32) {
    %c0_i32 = arith.constant 0 : i32
    %c0_i32_0 = arith.constant 0 : i32
    %c0_i32_1 = arith.constant 0 : i32
    return %c0_i32, %c0_i32_0 : i32, i32
  }
  func.func @transform_6(%arg0: i32) -> (i32, i32) {
    %c0_i32 = arith.constant 0 : i32
    %c0_i32_0 = arith.constant 0 : i32
    %c0_i32_1 = arith.constant 0 : i32
    return %c0_i32, %c0_i32_0 : i32, i32
  }
}

</mosaic_0001>

<bundles_post_ra>
// kernel: tpu_custom_call.1
= control target key start
LH: loop header
LB: loop body
LE: loop exit
PB: predicated region body
PF: predicated region fallthrough
CT: control target
= control target key end

     0   :  { %11 = vsyncpa [#allocation4], 0  ;;  %s3402_s0 = inlined_call_operand.hbm [shape: f32[8,128], index: 0, kind: input, shape index: {}]   ;;  %s3403_s1 = inlined_call_operand.vmem [shape: f32[1,128], index: 1, kind: input, shape index: {}]   ;;  %s3404_s2 = inlined_call_operand.hbm [shape: f32[128,384], index: 2, kind: input, shape index: {}]   ;;  %s3405_s3 = inlined_call_operand.hbm [shape: f32[128,384], index: 3, kind: input, shape index: {}]   ;;  %s3406_s4 = inlined_call_operand.vmem [shape: f32[1,384], index: 4, kind: input, shape index: {}]   ;;  %s3407_s5 = inlined_call_operand.vmem [shape: f32[1,384], index: 5, kind: input, shape index: {}]   ;;  %s3408_s6 = inlined_call_operand.hbm [shape: f32[8,128], index: 6, kind: output, shape index: {}]  }
   0x1   :  { %12 = vsyncpa [#allocation7], 0 }
   0x2   :  { %13 = vsyncpa [#allocation5], 0  ;;  %s2885_s21 = smov [#allocation6]   ;;  %s2791_s25 = scalar_lea.hbm %s3404_s2, 6144 }
   0x3   :  { %s31_s22 = sshll.u32 %s2885_s21, 4  ;;  %p2792_p0 = scmp.ne.s32.totalorder %s3404_s2, %s2791_s25  ;;  %s32_s22 = int_to_ptr.vmem [resolvable:$true] %s31_s22 }
   0x4   :  { %p2795_p1 = scmp.lt.u32.totalorder %s2791_s25, %s3404_s2 }
   0x6   :  { %p2797_p2 = pnand %p2795_p1, %p2792_p0 }
   0x8   :  { %2800 = shalt.err (!%p2797_p2)
}
   0x9   :  { %s2801_s30 = scalar_lea.vmem %s32_s22, 6144  ;;  %p2806_p4 = scmp.lt.s32.totalorder %s32_s22, %s32_s22 }
   0xa   :  { %p2802_p3 = scmp.ne.s32.totalorder %s32_s22, %s2801_s30  ;;  %p2807_p5 = scmp.lt.s32.totalorder %s2801_s30, %s2801_s30 }
   0xc   :  { %p2808_p6 = por %p2807_p5, %p2806_p4 }
   0xe   :  { %p2809_p7 = pnand %p2808_p6, %p2802_p3 }
  0x10   :  { %2812 = shalt.err (!%p2809_p7)
}
  0x11   :  { %s2886_s7 = smov 384   ;;  %s2887_s8 = smov 24  }
  0x12   :  { %37 = dma.hbm_to_vmem [thread:$0]  %s3404_s2, 6144, %s32_s22, [#allocation7], %s2886_s7, %s2886_s7, %s2887_s8  }
  0x13   :  { %s2888_s11 = smov [#allocation3]   ;;  %s2889_s13 = smov [#allocation8]  }
  0x14   :  { %s20_s12 = sshll.u32 %s2888_s11, 4  ;;  %s43_s14 = sshll.u32 %s2889_s13, 4  ;;  %s21_s12 = int_to_ptr.vmem [resolvable:$true] %s20_s12  ;;  %s44_s14 = int_to_ptr.vmem [resolvable:$true] %s43_s14 }
  0x15   :  { %s2813_s17 = scalar_lea.hbm %s3402_s0, 128 }
  0x16   :  { %p2814_p8 = scmp.ne.s32.totalorder %s3402_s0, %s2813_s17  ;;  %p2817_p9 = scmp.lt.u32.totalorder %s2813_s17, %s3402_s0 }
  0x18   :  { %p2819_p10 = pnand %p2817_p9, %p2814_p8 }
  0x1a   :  { %2822 = shalt.err (!%p2819_p10)
}
  0x1b   :  { %s2823_s2 = scalar_lea.vmem %s21_s12, 128  ;;  %p2828_p12 = scmp.lt.s32.totalorder %s21_s12, %s21_s12 }
  0x1c   :  { %p2824_p11 = scmp.ne.s32.totalorder %s21_s12, %s2823_s2  ;;  %p2829_p13 = scmp.lt.s32.totalorder %s2823_s2, %s2823_s2 }
  0x1e   :  { %p2830_p0 = por %p2829_p13, %p2828_p12 }
  0x20   :  { %p2831_p1 = pnand %p2830_p0, %p2824_p11 }
  0x22   :  { %2834 = shalt.err (!%p2831_p1)
}
  0x23   :  { %23 = dma.hbm_to_vmem [thread:$0]  %s3402_s0, 128, %s21_s12, [#allocation4]  }
  0x24   :  { %s2835_s26 = scalar_lea.hbm %s3405_s3, 6144 }
  0x25   :  { %p2836_p2 = scmp.ne.s32.totalorder %s3405_s3, %s2835_s26  ;;  %p2839_p3 = scmp.lt.u32.totalorder %s2835_s26, %s3405_s3 }
  0x27   :  { %p2841_p4 = pnand %p2839_p3, %p2836_p2 }
  0x29   :  { %2844 = shalt.err (!%p2841_p4)
}
  0x2a   :  { %s2845_s9 = scalar_lea.vmem %s44_s14, 6144  ;;  %p2850_p6 = scmp.lt.s32.totalorder %s44_s14, %s44_s14 }
  0x2b   :  { %p2846_p5 = scmp.ne.s32.totalorder %s44_s14, %s2845_s9  ;;  %p2851_p7 = scmp.lt.s32.totalorder %s2845_s9, %s2845_s9 }
  0x2d   :  { %p2852_p8 = por %p2851_p7, %p2850_p6 }
  0x2f   :  { %p2853_p9 = pnand %p2852_p8, %p2846_p5 }
  0x31   :  { %2856 = shalt.err (!%p2853_p9)
}
  0x32   :  { %49 = dma.hbm_to_vmem [thread:$0]  %s3405_s3, 6144, %s44_s14, [#allocation7], %s2886_s7, %s2886_s7, %s2887_s8  }
  0x33   :  { %2879 = dma.done.wait [#allocation4], 128  }
  0x34   :  { %2880 = vsyncadd [#allocation4], 4294967168 }
  0x35   :  { %2881 = dma.done.wait [#allocation7], 12288  }
  0x36   :  { %2882 = vsyncadd [#allocation7], 4294955008  ;;  %v2890_v0 = vmov 0.0|0.0   ;;  %v2891_v1 = vmov 0.0   ;;  %vm2892_vm0 = vmmov 0   ;;  %v65_v2 = vld [vmem:[#allocation6 + $0x8] sm:$0xff] }
  0x37   :  { %2230 = vmatprep.subr.bf16.mxu1 %v2890_v0  ;;  %193 = vmatprep.mubr.f32.mxu0 %v2891_v1  ;;  %v68_v3 = vld [vmem:[#allocation6 + $0x20] sm:$0xff]  ;;  %v67_v6 = vld [vmem:[#allocation6 + $0x18] sm:$0xff]  ;;  %v66_v7 = vld [vmem:[#allocation6 + $0x10] sm:$0xff] }
  0x38   :  { %1915 = vmatprep.mubr.msk.f32.mxu1 %vm2892_vm0, %v2891_v1  ;;  %v64_v4 = vld [vmem:[#allocation6] sm:$0xff]  ;;  %v2198_v5 = vpack.c.bf16 %v68_v3, %v65_v2  ;;  %v69_v8 = vld [vmem:[#allocation6 + $0x28] sm:$0xff]  ;;  %v71_v11 = vld [vmem:[#allocation6 + $0x38] sm:$0xff] }
  0x39   :  { %v2200_v9 = vpack.c.bf16 %v67_v6, %v64_v4  ;;  %v2231_v10 = vpack.c.bf16 %v69_v8, %v66_v7  ;;  %v74_v12 = vld [vmem:[#allocation6 + $0x50] sm:$0xff]  ;;  %v73_v15 = vld [vmem:[#allocation6 + $0x48] sm:$0xff]  ;;  %v72_v16 = vld [vmem:[#allocation6 + $0x40] sm:$0xff] }
  0x3a   :  { %v70_v13 = vld [vmem:[#allocation6 + $0x30] sm:$0xff]  ;;  %2199 = vmatprep.subr.bf16.mxu0 %v2198_v5  ;;  %v2202_v14 = vpack.c.bf16 %v74_v12, %v71_v11  ;;  %v75_v17 = vld [vmem:[#allocation6 + $0x58] sm:$0xff]  ;;  %v77_v20 = vld [vmem:[#allocation6 + $0x68] sm:$0xff] }
  0x3b   :  { %2201 = vmatpush1.bf16.msra.mxu0 %v2200_v9  ;;  %2232 = vmatpush3.bf16.msra.mxu1 %v2231_v10  ;;  %v2204_v18 = vpack.c.bf16 %v73_v15, %v70_v13  ;;  %v2234_v19 = vpack.c.bf16 %v75_v17, %v72_v16  ;;  %v80_v21 = vld [vmem:[#allocation6 + $0x80] sm:$0xff]  ;;  %v79_v24 = vld [vmem:[#allocation6 + $0x78] sm:$0xff]  ;;  %v78_v25 = vld [vmem:[#allocation6 + $0x70] sm:$0xff] }
  0x3c   :  { %v76_v22 = vld [vmem:[#allocation6 + $0x60] sm:$0xff]  ;;  %2203 = vmatprep.subr.bf16.mxu0 %v2202_v14  ;;  %2233 = vmatprep.subr.bf16.mxu1 %v2890_v0  ;;  %v2206_v23 = vpack.c.bf16 %v80_v21, %v77_v20  ;;  %v81_v26 = vld [vmem:[#allocation6 + $0x88] sm:$0xff]  ;;  %v83_v27 = vld [vmem:[#allocation6 + $0x98] sm:$0xff] }
  0x3d   :  { %v86_v28 = vld [vmem:[#allocation6 + $0xb0] sm:$0xff]  ;;  %v2208_v29 = vpack.c.bf16 %v79_v24, %v76_v22  ;;  %v2237_v30 = vpack.c.bf16 %v81_v26, %v78_v25  ;;  %v85_v33 = vld [vmem:[#allocation6 + $0xa8] sm:$0xff]  ;;  %v84_v34 = vld [vmem:[#allocation6 + $0xa0] sm:$0xff] }
  0x3e   :  { %v82_v31 = vld [vmem:[#allocation6 + $0x90] sm:$0xff]  ;;  %v2210_v32 = vpack.c.bf16 %v86_v28, %v83_v27  ;;  %v87_v35 = vld [vmem:[#allocation6 + $0xb8] sm:$0xff]  ;;  %v89_v36 = vld [vmem:[#allocation6 + $0xc8] sm:$0xff] }
  0x3f   :  { %2205 = vmatpush1.bf16.msra.mxu0 %v2204_v18  ;;  %2235 = vmatpush3.bf16.msra.mxu1 %v2234_v19  ;;  %v92_v37 = vld [vmem:[#allocation6 + $0xe0] sm:$0xff]  ;;  %v2212_v38 = vpack.c.bf16 %v85_v33, %v82_v31  ;;  %v2240_v39 = vpack.c.bf16 %v87_v35, %v84_v34  ;;  %v91_v42 = vld [vmem:[#allocation6 + $0xd8] sm:$0xff]  ;;  %v90_v43 = vld [vmem:[#allocation6 + $0xd0] sm:$0xff] }
  0x40   :  { %2207 = vmatprep.subr.bf16.mxu0 %v2206_v23  ;;  %2236 = vmatprep.subr.bf16.mxu1 %v2890_v0  ;;  %v88_v40 = vld [vmem:[#allocation6 + $0xc0] sm:$0xff]  ;;  %v2214_v41 = vpack.c.bf16 %v92_v37, %v89_v36  ;;  %v93_v44 = vld [vmem:[#allocation6 + $0xe8] sm:$0xff]  ;;  %v95_v45 = vld [vmem:[#allocation6 + $0xf8] sm:$0xff] }
  0x41   :  { %v98_v46 = vld [vmem:[#allocation6 + $0x110] sm:$0xff]  ;;  %v2216_v47 = vpack.c.bf16 %v91_v42, %v88_v40  ;;  %v2243_v48 = vpack.c.bf16 %v93_v44, %v90_v43  ;;  %v97_v51 = vld [vmem:[#allocation6 + $0x108] sm:$0xff]  ;;  %v96_v52 = vld [vmem:[#allocation6 + $0x100] sm:$0xff] }
  0x42   :  { %v94_v49 = vld [vmem:[#allocation6 + $0xf0] sm:$0xff]  ;;  %v2218_v50 = vpack.c.bf16 %v98_v46, %v95_v45  ;;  %v99_v53 = vld [vmem:[#allocation6 + $0x118] sm:$0xff]  ;;  %v101_v54 = vld [vmem:[#allocation6 + $0x128] sm:$0xff] }
  0x43   :  { %2209 = vmatpush1.bf16.msra.mxu0 %v2208_v29  ;;  %2238 = vmatpush3.bf16.msra.mxu1 %v2237_v30  ;;  %v104_v55 = vld [vmem:[#allocation6 + $0x140] sm:$0xff]  ;;  %v2220_v56 = vpack.c.bf16 %v97_v51, %v94_v49  ;;  %v2246_v57 = vpack.c.bf16 %v99_v53, %v96_v52  ;;  %v103_v60 = vld [vmem:[#allocation6 + $0x138] sm:$0xff]  ;;  %v102_v61 = vld [vmem:[#allocation6 + $0x130] sm:$0xff] }
  0x44   :  { %2211 = vmatprep.subr.bf16.mxu0 %v2210_v32  ;;  %2239 = vmatprep.subr.bf16.mxu1 %v2890_v0  ;;  %v100_v58 = vld [vmem:[#allocation6 + $0x120] sm:$0xff]  ;;  %v2222_v59 = vpack.c.bf16 %v104_v55, %v101_v54  ;;  %v105_v62 = vld [vmem:[#allocation6 + $0x148] sm:$0xff]  ;;  %v107_v63 = vld [vmem:[#allocation6 + $0x158] sm:$0xff] }
  0x45   :  { %v110_v2 = vld [vmem:[#allocation6 + $0x170] sm:$0xff]  ;;  %v2224_v3 = vpack.c.bf16 %v103_v60, %v100_v58  ;;  %v2249_v4 = vpack.c.bf16 %v105_v62, %v102_v61  ;;  %v109_v7 = vld [vmem:[#allocation6 + $0x168] sm:$0xff]  ;;  %v108_v8 = vld [vmem:[#allocation6 + $0x160] sm:$0xff] }
  0x46   :  { %v106_v5 = vld [vmem:[#allocation6 + $0x150] sm:$0xff]  ;;  %v2226_v6 = vpack.c.bf16 %v110_v2, %v107_v63  ;;  %v111_v9 = vld [vmem:[#allocation6 + $0x178] sm:$0xff]  ;;  %v274_v10 = vld [vmem:[#allocation8 + $0x8] sm:$0xff] }
  0x47   :  { %2213 = vmatpush1.bf16.msra.mxu0 %v2212_v38  ;;  %2241 = vmatpush3.bf16.msra.mxu1 %v2240_v39  ;;  %v277_v11 = vld [vmem:[#allocation8 + $0x20] sm:$0xff]  ;;  %v2228_v12 = vpack.c.bf16 %v109_v7, %v106_v5  ;;  %v2252_v13 = vpack.c.bf16 %v111_v9, %v108_v8  ;;  %v276_v16 = vld [vmem:[#allocation8 + $0x18] sm:$0xff]  ;;  %v275_v17 = vld [vmem:[#allocation8 + $0x10] sm:$0xff] }
  0x48   :  { %2215 = vmatprep.subr.bf16.mxu0 %v2214_v41  ;;  %2242 = vmatprep.subr.bf16.mxu1 %v2890_v0  ;;  %v273_v14 = vld [vmem:[#allocation8] sm:$0xff]  ;;  %v2982_v15 = vpack.c.bf16 %v277_v11, %v274_v10  ;;  %v278_v18 = vld [vmem:[#allocation8 + $0x28] sm:$0xff]  ;;  %v280_v19 = vld [vmem:[#allocation8 + $0x38] sm:$0xff] }
  0x49   :  { %v283_v20 = vld [vmem:[#allocation8 + $0x50] sm:$0xff]  ;;  %v63_v21 = vld [vmem:[#allocation3] sm:$0xff]  ;;  %v2984_v22 = vpack.c.bf16 %v276_v16, %v273_v14  ;;  %v2986_v24 = vpack.c.bf16 %v278_v18, %v275_v17  ;;  %v282_v26 = vld [vmem:[#allocation8 + $0x48] sm:$0xff] }
  0x4a   :  { %v279_v23 = vld [vmem:[#allocation8 + $0x30] sm:$0xff]  ;;  %v2989_v25 = vpack.c.bf16 %v283_v20, %v280_v19  ;;  %v281_v27 = vld [vmem:[#allocation8 + $0x40] sm:$0xff]  ;;  %v284_v28 = vld [vmem:[#allocation8 + $0x58] sm:$0xff] }
  0x4b   :  { %2217 = vmatpush1.bf16.msra.mxu0 %v2216_v47  ;;  %2244 = vmatpush3.bf16.msra.mxu1 %v2243_v48  ;;  %v286_v29 = vld [vmem:[#allocation8 + $0x68] sm:$0xff]  ;;  %v289_v30 = vld [vmem:[#allocation8 + $0x80] sm:$0xff]  ;;  %v2993_v31 = vpack.c.bf16 %v282_v26, %v279_v23  ;;  %v2996_v33 = vpack.c.bf16 %v284_v28, %v281_v27  ;;  %v288_v35 = vld [vmem:[#allocation8 + $0x78] sm:$0xff]  ;;  %v114_v28 = vlaneseq }
  0x4c   :  { %2219 = vmatprep.subr.bf16.mxu0 %v2218_v50  ;;  %2245 = vmatprep.subr.bf16.mxu1 %v2890_v0  ;;  %v285_v32 = vld [vmem:[#allocation8 + $0x60] sm:$0xff]  ;;  %v2999_v34 = vpack.c.bf16 %v289_v30, %v286_v29  ;;  %v287_v36 = vld [vmem:[#allocation8 + $0x70] sm:$0xff]  ;;  %v290_v37 = vld [vmem:[#allocation8 + $0x88] sm:$0xff] }
  0x4d   :  { %v292_v38 = vld [vmem:[#allocation8 + $0x98] sm:$0xff]  ;;  %v295_v39 = vld [vmem:[#allocation8 + $0xb0] sm:$0xff]  ;;  %v3006_v40 = vpack.c.bf16 %v288_v35, %v285_v32  ;;  %v3009_v42 = vpack.c.bf16 %v290_v37, %v287_v36  ;;  %v294_v44 = vld [vmem:[#allocation8 + $0xa8] sm:$0xff]  ;;  %v115_v29 = vshrl.u32 %v114_v28, 7 }
  0x4e   :  { %v291_v41 = vld [vmem:[#allocation8 + $0x90] sm:$0xff]  ;;  %v3012_v43 = vpack.c.bf16 %v295_v39, %v292_v38  ;;  %v293_v45 = vld [vmem:[#allocation8 + $0xa0] sm:$0xff]  ;;  %v296_v46 = vld [vmem:[#allocation8 + $0xb8] sm:$0xff] }
  0x4f   :  { %2221 = vmatpush1.bf16.msra.mxu0 %v2220_v56  ;;  %2247 = vmatpush3.bf16.msra.mxu1 %v2246_v57  ;;  %v298_v47 = vld [vmem:[#allocation8 + $0xc8] sm:$0xff]  ;;  %v301_v48 = vld [vmem:[#allocation8 + $0xe0] sm:$0xff]  ;;  %v3016_v49 = vpack.c.bf16 %v294_v44, %v291_v41  ;;  %v3019_v51 = vpack.c.bf16 %v296_v46, %v293_v45  ;;  %v300_v53 = vld [vmem:[#allocation8 + $0xd8] sm:$0xff]  ;;  %v116_v30 = vsub.s32 0, %v115_v29  ;;  %v124_v32 = vsub.s32 2, %v115_v29 }
  0x50   :  { %2223 = vmatprep.subr.bf16.mxu0 %v2222_v59  ;;  %2248 = vmatprep.subr.bf16.mxu1 %v2890_v0  ;;  %v297_v50 = vld [vmem:[#allocation8 + $0xc0] sm:$0xff]  ;;  %v3022_v52 = vpack.c.bf16 %v301_v48, %v298_v47  ;;  %v299_v54 = vld [vmem:[#allocation8 + $0xd0] sm:$0xff]  ;;  %v302_v55 = vld [vmem:[#allocation8 + $0xe8] sm:$0xff]  ;;  %v120_v36 = vsub.s32 1, %v115_v29 }
  0x51   :  { %v304_v56 = vld [vmem:[#allocation8 + $0xf8] sm:$0xff]  ;;  %v307_v57 = vld [vmem:[#allocation8 + $0x110] sm:$0xff]  ;;  %v3026_v58 = vpack.c.bf16 %v300_v53, %v297_v50  ;;  %v3029_v60 = vpack.c.bf16 %v302_v55, %v299_v54  ;;  %v306_v62 = vld [vmem:[#allocation8 + $0x108] sm:$0xff] }
  0x52   :  { %v303_v59 = vld [vmem:[#allocation8 + $0xf0] sm:$0xff]  ;;  %v3032_v61 = vpack.c.bf16 %v307_v57, %v304_v56  ;;  %v305_v63 = vld [vmem:[#allocation8 + $0x100] sm:$0xff]  ;;  %v308_v2 = vld [vmem:[#allocation8 + $0x118] sm:$0xff] }
  0x53   :  { %2225 = vmatpush1.bf16.msra.mxu0 %v2224_v3  ;;  %2250 = vmatpush3.bf16.msra.mxu1 %v2249_v4  ;;  %v310_v3 = vld [vmem:[#allocation8 + $0x128] sm:$0xff]  ;;  %v313_v4 = vld [vmem:[#allocation8 + $0x140] sm:$0xff]  ;;  %v3036_v5 = vpack.c.bf16 %v306_v62, %v303_v59  ;;  %v3039_v7 = vpack.c.bf16 %v308_v2, %v305_v63  ;;  %v312_v9 = vld [vmem:[#allocation8 + $0x138] sm:$0xff] }
  0x54   :  { %2227 = vmatprep.subr.bf16.mxu0 %v2226_v6  ;;  %2251 = vmatprep.subr.bf16.mxu1 %v2890_v0  ;;  %v309_v6 = vld [vmem:[#allocation8 + $0x120] sm:$0xff]  ;;  %v3042_v8 = vpack.c.bf16 %v313_v4, %v310_v3  ;;  %v311_v10 = vld [vmem:[#allocation8 + $0x130] sm:$0xff]  ;;  %v314_v11 = vld [vmem:[#allocation8 + $0x148] sm:$0xff] }
  0x55   :  { %v3046_v14 = vpack.c.bf16 %v312_v9, %v309_v6  ;;  %v315_v16 = vld [vmem:[#allocation8 + $0x150] sm:$0xff]  ;;  %v3049_v17 = vpack.c.bf16 %v314_v11, %v311_v10  ;;  %v318_v19 = vld [vmem:[#allocation8 + $0x168] sm:$0xff]  ;;  %v317_v20 = vld [vmem:[#allocation8 + $0x160] sm:$0xff] }
  0x56   :  { %v3056_v23 = vpack.c.bf16 %v318_v19, %v315_v16  ;;  %v3067_v27 = vld [vmem:[%s3403_s1] sm:$0x1] }
  0x57   :  { %2229 = vmatpush1.bf16.msra.mxu0 %v2228_v12  ;;  %2253 = vmatpush3.bf16.msra.mxu1 %v2252_v13  ;;  %v316_v12 = vld [vmem:[#allocation8 + $0x158] sm:$0xff]  ;;  %v319_v13 = vld [vmem:[#allocation8 + $0x170] sm:$0xff]  ;;  %v112_v35 = vld [vmem:[%s3406_s4] sm:$0x7]  ;;  %s2893_s4 = smov [#allocation9]  }
  0x58   :  { %2255 = vmatprep.subr.bf16.mxu0 %v2982_v15  ;;  %2286 = vmatprep.subr.bf16.mxu1 %v2890_v0  ;;  %v3052_v18 = vpack.c.bf16 %v319_v13, %v316_v12  ;;  %v117_v37 = vrot.slane %v112_v35, %v116_v30  ;;  %v125_v38 = vrot.slane %v112_v35, %v124_v32  ;;  %v321_v53 = vld [vmem:[%s3407_s5] sm:$0x7]  ;;  %s1704_s5 = sshll.u32 %s2893_s4, 4  ;;  %s1705_s5 = int_to_ptr.vmem [resolvable:$true] %s1704_s5 }
  0x59   :  { %v121_v39 = vrot.slane %v112_v35, %v120_v36  ;;  %v3115_v54 = vrot.slane %v321_v53, %v116_v30  ;;  %v3117_v55 = vrot.slane %v321_v53, %v120_v36  ;;  %v3121_v16 = vrot.slane %v321_v53, %v124_v32  ;;  %s2857_s13 = scalar_lea.vmem %s1705_s5, 128  ;;  %p2862_p11 = scmp.lt.s32.totalorder %s1705_s5, %s1705_s5 }
  0x5a   :  { %194 = vmatmul.mubr.f32.vlgmr.msra.gmra.mrb[0].mxu0 %v63_v21  ;;  %1916 = vmatmul.mubr.f32.vlgmr.msra.gmra.mrb[0].mxu1 %v63_v21  ;;  %v320_v21 = vld [vmem:[#allocation8 + $0x178] sm:$0xff]  ;;  %p2858_p10 = scmp.ne.s32.totalorder %s1705_s5, %s2857_s13  ;;  %p2863_p12 = scmp.lt.s32.totalorder %s2857_s13, %s2857_s13 }
  0x5b   :  { %2257 = vmatpush1.bf16.msra.mxu0 %v2984_v22  ;;  %2288 = vmatpush3.bf16.msra.mxu1 %v2986_v24  ;;  %v3059_v26 = vpack.c.bf16 %v320_v21, %v317_v20 }
  0x5c   :  { %2259 = vmatprep.subr.bf16.mxu0 %v2989_v25  ;;  %404 = vmatprep.mubr.f32.mxu0 %v2891_v1  ;;  %p2864_p13 = por %p2863_p12, %p2862_p11 }
  0x5d   :  { %2289 = vmatprep.subr.bf16.mxu1 %v2890_v0  ;;  %1950 = vmatprep.mubr.msk.f32.mxu1 %vm2892_vm0, %v2891_v1 }
  0x5e   :  { %p2865_p0 = pnand %p2864_p13, %p2858_p10 }
  0x5f   :  { %2261 = vmatpush1.bf16.msra.mxu0 %v2993_v31  ;;  %2291 = vmatpush3.bf16.msra.mxu1 %v2996_v33 }
  0x60   :  { %2263 = vmatprep.subr.bf16.mxu0 %v2999_v34  ;;  %2292 = vmatprep.subr.bf16.mxu1 %v2890_v0 }
  0x63   :  { %2265 = vmatpush1.bf16.msra.mxu0 %v3006_v40  ;;  %2294 = vmatpush3.bf16.msra.mxu1 %v3009_v42 }
  0x64   :  { %2267 = vmatprep.subr.bf16.mxu0 %v3012_v43  ;;  %2295 = vmatprep.subr.bf16.mxu1 %v2890_v0 }
  0x67   :  { %2269 = vmatpush1.bf16.msra.mxu0 %v3016_v49  ;;  %2297 = vmatpush3.bf16.msra.mxu1 %v3019_v51 }
  0x68   :  { %2271 = vmatprep.subr.bf16.mxu0 %v3022_v52  ;;  %2298 = vmatprep.subr.bf16.mxu1 %v2890_v0 }
  0x6b   :  { %2273 = vmatpush1.bf16.msra.mxu0 %v3026_v58  ;;  %2300 = vmatpush3.bf16.msra.mxu1 %v3029_v60 }
  0x6c   :  { %2275 = vmatprep.subr.bf16.mxu0 %v3032_v61  ;;  %2301 = vmatprep.subr.bf16.mxu1 %v2890_v0 }
  0x6f   :  { %2277 = vmatpush1.bf16.msra.mxu0 %v3036_v5  ;;  %2303 = vmatpush3.bf16.msra.mxu1 %v3039_v7 }
  0x70   :  { %2279 = vmatprep.subr.bf16.mxu0 %v3042_v8  ;;  %2304 = vmatprep.subr.bf16.mxu1 %v2890_v0 }
  0x73   :  { %2281 = vmatpush1.bf16.msra.mxu0 %v3046_v14  ;;  %2306 = vmatpush3.bf16.msra.mxu1 %v3049_v17 }
  0x74   :  { %2283 = vmatprep.subr.bf16.mxu0 %v3052_v18  ;;  %2307 = vmatprep.subr.bf16.mxu1 %v2890_v0 }
  0x77   :  { %2285 = vmatpush1.bf16.msra.mxu0 %v3056_v23  ;;  %2309 = vmatpush3.bf16.msra.mxu1 %v3059_v26 }
  0x78   :  { %2311 = vmatprep.subr.bf16.mxu0 %v2982_v15  ;;  %2342 = vmatprep.subr.bf16.mxu1 %v2890_v0 }
  0x7a   :  { %405 = vmatmul.mubr.f32.vlgmr.msra.gmra.mrb[2].mxu0 %v3067_v27  ;;  %1951 = vmatmul.mubr.f32.vlgmr.msra.gmra.mrb[2].mxu1 %v3067_v27 }
  0x7b   :  { %2313 = vmatpush1.bf16.msra.mxu0 %v2984_v22  ;;  %2344 = vmatpush3.bf16.msra.mxu1 %v2986_v24 }
  0x7c   :  { %2315 = vmatprep.subr.bf16.mxu0 %v2989_v25  ;;  %2345 = vmatprep.subr.bf16.mxu1 %v2890_v0 }
  0x7d   :  { %574 = vmatprep.mubr.f32.mxu0 %v2891_v1  ;;  %1985 = vmatprep.mubr.msk.f32.mxu1 %vm2892_vm0, %v2891_v1 }
  0x7f   :  { %2317 = vmatpush1.bf16.msra.mxu0 %v2993_v31  ;;  %2347 = vmatpush3.bf16.msra.mxu1 %v2996_v33 }
  0x80   :  { %2319 = vmatprep.subr.bf16.mxu0 %v2999_v34  ;;  %2348 = vmatprep.subr.bf16.mxu1 %v2890_v0 }
  0x83   :  { %2321 = vmatpush1.bf16.msra.mxu0 %v3006_v40  ;;  %2350 = vmatpush3.bf16.msra.mxu1 %v3009_v42 }
  0x84   :  { %2323 = vmatprep.subr.bf16.mxu0 %v3012_v43  ;;  %2351 = vmatprep.subr.bf16.mxu1 %v2890_v0 }
  0x87   :  { %2325 = vmatpush1.bf16.msra.mxu0 %v3016_v49  ;;  %2353 = vmatpush3.bf16.msra.mxu1 %v3019_v51 }
  0x88   :  { %2327 = vmatprep.subr.bf16.mxu0 %v3022_v52  ;;  %2354 = vmatprep.subr.bf16.mxu1 %v2890_v0 }
  0x8b   :  { %2329 = vmatpush1.bf16.msra.mxu0 %v3026_v58  ;;  %2356 = vmatpush3.bf16.msra.mxu1 %v3029_v60 }
  0x8c   :  { %2331 = vmatprep.subr.bf16.mxu0 %v3032_v61  ;;  %2357 = vmatprep.subr.bf16.mxu1 %v2890_v0 }
  0x8f   :  { %2333 = vmatpush1.bf16.msra.mxu0 %v3036_v5  ;;  %2359 = vmatpush3.bf16.msra.mxu1 %v3039_v7 }
  0x90   :  { %2335 = vmatprep.subr.bf16.mxu0 %v3042_v8  ;;  %2360 = vmatprep.subr.bf16.mxu1 %v2890_v0 }
  0x93   :  { %2337 = vmatpush1.bf16.msra.mxu0 %v3046_v14  ;;  %2362 = vmatpush3.bf16.msra.mxu1 %v3049_v17 }
  0x94   :  { %2339 = vmatprep.subr.bf16.mxu0 %v3052_v18  ;;  %2363 = vmatprep.subr.bf16.mxu1 %v2890_v0 }
  0x97   :  { %2341 = vmatpush1.bf16.msra.mxu0 %v3056_v23  ;;  %2365 = vmatpush3.bf16.msra.mxu1 %v3059_v26 }
  0x98   :  { %2367 = vmatprep.subr.bf16.mxu0 %v2982_v15  ;;  %2398 = vmatprep.subr.bf16.mxu1 %v2890_v0 }
 0x12d   :  { %v195_v41 = vpop.f32.mrb[0].mxu0  ;;  %v266_v44 = vpop.f32.mrb[0].mxu1 }
 0x12e   :  { %v196_v45 = vadd.f32 %v195_v41, %v117_v37  ;;  %v197_v46 = vpop.f32.mrb[1].mxu0  ;;  %v267_v47 = vadd.f32 %v266_v44, %v125_v38  ;;  %v1917_v48 = vpop.f32.mrb[1].mxu1 }
 0x12f   :  { %v198_v50 = vadd.f32 %v197_v46, %v121_v39 }
 0x130   :  { %270 = vst [vmem:[#allocation2] sm:$0xff] %v196_v45  ;;  %272 = vst [vmem:[#allocation2 + $0x10] sm:$0xff] %v267_v47 }
 0x131   :  { %271 = vst [vmem:[#allocation2 + $0x8] sm:$0xff] %v198_v50 }
 0x138   :  { %v323_v59 = vld [vmem:[#allocation2] ss:$8 sm:$0x7]  ;;  %v509_v45 = vld [vmem:[#allocation2 + $0x1] ss:$8 sm:$0x7] }
 0x139   :  { %v489_v6 = vrot.slane %v323_v59, 1  ;;  %v499_v30 = vrot.slane %v323_v59, 2 }
 0x14d   :  { %v406_v56 = vpop.f32.mrb[2].mxu0  ;;  %v477_v57 = vpop.f32.mrb[2].mxu1 }
 0x14e   :  { %v407_v62 = vadd.f32 %v406_v56, %v3115_v54  ;;  %v408_v63 = vpop.f32.mrb[3].mxu0  ;;  %v1952_v2 = vpop.f32.mrb[3].mxu1  ;;  %v478_v21 = vadd.f32 %v477_v57, %v3121_v16  ;;  %v659_v56 = vrot.slane %v509_v45, 1 }
 0x14f   :  { %v409_v3 = vadd.f32 %v408_v63, %v3117_v55 }
 0x150   :  { %v481_v4 = vadd.f32 %v407_v62, %v323_v59 }
 0x151   :  { %v491_v10 = vadd.f32 %v489_v6, %v409_v3 }
 0x152   :  { %v1714_v9 = vmul.f32 -1.442695, %v481_v4 }
 0x153   :  { %v1715_v11 = vmul.f32 -1.442695, %v491_v10 }
 0x154   :  { %2711 = vpow2.f32 %v1714_v9 }
 0x155   :  { %2713 = vpow2.f32 %v1715_v11  ;;  %v669_v11 = vrot.slane %v509_v45, 2 }
 0x15e   :  { %v2712_v12 = vpop.eup %2711 }
 0x15f   :  { %v485_v13 = vadd.f32 1.0, %v2712_v12  ;;  %v2714_v19 = vpop.eup %2713 }
 0x160   :  { %v495_v20 = vadd.f32 1.0, %v2714_v19 }
 0x161   :  { %2715 = vrcp.f32 %v485_v13 }
 0x162   :  { %2717 = vrcp.f32 %v495_v20 }
 0x16b   :  { %v2716_v28 = vpop.eup %2715 }
 0x16c   :  { %v498_v29 = vmul.f32 %v2716_v28, %v478_v21  ;;  %v2718_v36 = vpop.eup %2717 }
 0x16d   :  { %v503_v37 = vsub.f32 1.0, %v2718_v36  ;;  %v505_v41 = vmul.f32 %v2718_v36, %v3067_v27  ;;  %v679_v36 = vld [vmem:[#allocation2 + $0x2] ss:$8 sm:$0x7] }
 0x16e   :  { %v501_v35 = vadd.f32 %v499_v30, %v498_v29 }
 0x170   :  { %2719 = vtanh.f32 %v501_v35 }
 0x17a   :  { %v2720_v38 = vpop.eup %2719 }
 0x17b   :  { %v504_v39 = vmul.f32 %v2720_v38, %v503_v37 }
 0x17d   :  { %v3125_v44 = vadd.f32 %v505_v41, %v504_v39 }
 0x17f   :  { %507 = vst [vmem:[#allocation9] sm:$0x1] %v3125_v44  ;;  %575 = vmatmul.mubr.f32.vlgmr.msra.gmra.mrb[4].mxu0 %v3125_v44  ;;  %1986 = vmatmul.mubr.f32.vlgmr.msra.gmra.mrb[4].mxu1 %v3125_v44 }
 0x180   :  { %2369 = vmatpush1.bf16.msra.mxu0 %v2984_v22  ;;  %2400 = vmatpush3.bf16.msra.mxu1 %v2986_v24 }
 0x181   :  { %2371 = vmatprep.subr.bf16.mxu0 %v2989_v25  ;;  %2401 = vmatprep.subr.bf16.mxu1 %v2890_v0 }
 0x182   :  { %744 = vmatprep.mubr.f32.mxu0 %v2891_v1  ;;  %2020 = vmatprep.mubr.msk.f32.mxu1 %vm2892_vm0, %v2891_v1 }
 0x184   :  { %2373 = vmatpush1.bf16.msra.mxu0 %v2993_v31  ;;  %2403 = vmatpush3.bf16.msra.mxu1 %v2996_v33 }
 0x185   :  { %2375 = vmatprep.subr.bf16.mxu0 %v2999_v34  ;;  %2404 = vmatprep.subr.bf16.mxu1 %v2890_v0 }
 0x188   :  { %2377 = vmatpush1.bf16.msra.mxu0 %v3006_v40  ;;  %2406 = vmatpush3.bf16.msra.mxu1 %v3009_v42 }
 0x189   :  { %2379 = vmatprep.subr.bf16.mxu0 %v3012_v43  ;;  %2407 = vmatprep.subr.bf16.mxu1 %v2890_v0 }
 0x18c   :  { %2381 = vmatpush1.bf16.msra.mxu0 %v3016_v49  ;;  %2409 = vmatpush3.bf16.msra.mxu1 %v3019_v51 }
 0x18d   :  { %2383 = vmatprep.subr.bf16.mxu0 %v3022_v52  ;;  %2410 = vmatprep.subr.bf16.mxu1 %v2890_v0 }
 0x190   :  { %2385 = vmatpush1.bf16.msra.mxu0 %v3026_v58  ;;  %2412 = vmatpush3.bf16.msra.mxu1 %v3029_v60 }
 0x191   :  { %2387 = vmatprep.subr.bf16.mxu0 %v3032_v61  ;;  %2413 = vmatprep.subr.bf16.mxu1 %v2890_v0 }
 0x194   :  { %2389 = vmatpush1.bf16.msra.mxu0 %v3036_v5  ;;  %2415 = vmatpush3.bf16.msra.mxu1 %v3039_v7 }
 0x195   :  { %2391 = vmatprep.subr.bf16.mxu0 %v3042_v8  ;;  %2416 = vmatprep.subr.bf16.mxu1 %v2890_v0 }
 0x198   :  { %2393 = vmatpush1.bf16.msra.mxu0 %v3046_v14  ;;  %2418 = vmatpush3.bf16.msra.mxu1 %v3049_v17 }
 0x199   :  { %2395 = vmatprep.subr.bf16.mxu0 %v3052_v18  ;;  %2419 = vmatprep.subr.bf16.mxu1 %v2890_v0 }
 0x19c   :  { %2397 = vmatpush1.bf16.msra.mxu0 %v3056_v23  ;;  %2421 = vmatpush3.bf16.msra.mxu1 %v3059_v26 }
 0x19d   :  { %2423 = vmatprep.subr.bf16.mxu0 %v2982_v15  ;;  %2454 = vmatprep.subr.bf16.mxu1 %v2890_v0 }
 0x252   :  { %v576_v27 = vpop.f32.mrb[4].mxu0  ;;  %v647_v32 = vpop.f32.mrb[4].mxu1 }
 0x253   :  { %v577_v46 = vadd.f32 %v576_v27, %v3115_v54  ;;  %v578_v47 = vpop.f32.mrb[5].mxu0  ;;  %v1987_v48 = vpop.f32.mrb[5].mxu1  ;;  %v648_v6 = vadd.f32 %v647_v32, %v3121_v16  ;;  %v829_v27 = vrot.slane %v679_v36, 1 }
 0x254   :  { %v579_v50 = vadd.f32 %v578_v47, %v3117_v55 }
 0x255   :  { %v651_v53 = vadd.f32 %v577_v46, %v509_v45 }
 0x256   :  { %v661_v59 = vadd.f32 %v659_v56, %v579_v50 }
 0x257   :  { %v1716_v57 = vmul.f32 -1.442695, %v651_v53 }
 0x258   :  { %v1717_v62 = vmul.f32 -1.442695, %v661_v59 }
 0x259   :  { %2721 = vpow2.f32 %v1716_v57 }
 0x25a   :  { %2723 = vpow2.f32 %v1717_v62  ;;  %v839_v62 = vrot.slane %v679_v36, 2 }
 0x263   :  { %v2722_v63 = vpop.eup %2721 }
 0x264   :  { %v655_v2 = vadd.f32 1.0, %v2722_v63  ;;  %v2724_v3 = vpop.eup %2723 }
 0x265   :  { %v665_v4 = vadd.f32 1.0, %v2724_v3 }
 0x266   :  { %2725 = vrcp.f32 %v655_v2 }
 0x267   :  { %2727 = vrcp.f32 %v665_v4 }
 0x270   :  { %v2726_v9 = vpop.eup %2725 }
 0x271   :  { %v668_v10 = vmul.f32 %v2726_v9, %v648_v6  ;;  %v2728_v13 = vpop.eup %2727 }
 0x272   :  { %v673_v19 = vsub.f32 1.0, %v2728_v13  ;;  %v675_v28 = vmul.f32 %v2728_v13, %v3125_v44  ;;  %v849_v13 = vld [vmem:[#allocation2 + $0x3] ss:$8 sm:$0x7] }
 0x273   :  { %v671_v12 = vadd.f32 %v669_v11, %v668_v10 }
 0x275   :  { %2729 = vtanh.f32 %v671_v12 }
 0x27f   :  { %v2730_v20 = vpop.eup %2729 }
 0x280   :  { %v674_v21 = vmul.f32 %v2730_v20, %v673_v19 }
 0x282   :  { %v3169_v29 = vadd.f32 %v675_v28, %v674_v21 }
 0x284   :  { %677 = vst [vmem:[#allocation9 + $0x1] sm:$0x1] %v3169_v29  ;;  %745 = vmatmul.mubr.f32.vlgmr.msra.gmra.mrb[6].mxu0 %v3169_v29  ;;  %2021 = vmatmul.mubr.f32.vlgmr.msra.gmra.mrb[6].mxu1 %v3169_v29 }
 0x285   :  { %2425 = vmatpush1.bf16.msra.mxu0 %v2984_v22  ;;  %2456 = vmatpush3.bf16.msra.mxu1 %v2986_v24 }
 0x286   :  { %2427 = vmatprep.subr.bf16.mxu0 %v2989_v25  ;;  %2457 = vmatprep.subr.bf16.mxu1 %v2890_v0 }
 0x287   :  { %914 = vmatprep.mubr.f32.mxu0 %v2891_v1  ;;  %2055 = vmatprep.mubr.msk.f32.mxu1 %vm2892_vm0, %v2891_v1 }
 0x289   :  { %2429 = vmatpush1.bf16.msra.mxu0 %v2993_v31  ;;  %2459 = vmatpush3.bf16.msra.mxu1 %v2996_v33 }
 0x28a   :  { %2431 = vmatprep.subr.bf16.mxu0 %v2999_v34  ;;  %2460 = vmatprep.subr.bf16.mxu1 %v2890_v0 }
 0x28d   :  { %2433 = vmatpush1.bf16.msra.mxu0 %v3006_v40  ;;  %2462 = vmatpush3.bf16.msra.mxu1 %v3009_v42 }
 0x28e   :  { %2435 = vmatprep.subr.bf16.mxu0 %v3012_v43  ;;  %2463 = vmatprep.subr.bf16.mxu1 %v2890_v0 }
 0x291   :  { %2437 = vmatpush1.bf16.msra.mxu0 %v3016_v49  ;;  %2465 = vmatpush3.bf16.msra.mxu1 %v3019_v51 }
 0x292   :  { %2439 = vmatprep.subr.bf16.mxu0 %v3022_v52  ;;  %2466 = vmatprep.subr.bf16.mxu1 %v2890_v0 }
 0x295   :  { %2441 = vmatpush1.bf16.msra.mxu0 %v3026_v58  ;;  %2468 = vmatpush3.bf16.msra.mxu1 %v3029_v60 }
 0x296   :  { %2443 = vmatprep.subr.bf16.mxu0 %v3032_v61  ;;  %2469 = vmatprep.subr.bf16.mxu1 %v2890_v0 }
 0x299   :  { %2445 = vmatpush1.bf16.msra.mxu0 %v3036_v5  ;;  %2471 = vmatpush3.bf16.msra.mxu1 %v3039_v7 }
 0x29a   :  { %2447 = vmatprep.subr.bf16.mxu0 %v3042_v8  ;;  %2472 = vmatprep.subr.bf16.mxu1 %v2890_v0 }
 0x29d   :  { %2449 = vmatpush1.bf16.msra.mxu0 %v3046_v14  ;;  %2474 = vmatpush3.bf16.msra.mxu1 %v3049_v17 }
 0x29e   :  { %2451 = vmatprep.subr.bf16.mxu0 %v3052_v18  ;;  %2475 = vmatprep.subr.bf16.mxu1 %v2890_v0 }
 0x2a1   :  { %2453 = vmatpush1.bf16.msra.mxu0 %v3056_v23  ;;  %2477 = vmatpush3.bf16.msra.mxu1 %v3059_v26 }
 0x2a2   :  { %2479 = vmatprep.subr.bf16.mxu0 %v2982_v15  ;;  %2510 = vmatprep.subr.bf16.mxu1 %v2890_v0 }
 0x357   :  { %v746_v30 = vpop.f32.mrb[6].mxu0  ;;  %v817_v35 = vpop.f32.mrb[6].mxu1 }
 0x358   :  { %v747_v37 = vadd.f32 %v746_v30, %v3115_v54  ;;  %v748_v38 = vpop.f32.mrb[7].mxu0  ;;  %v2022_v39 = vpop.f32.mrb[7].mxu1  ;;  %v818_v56 = vadd.f32 %v817_v35, %v3121_v16  ;;  %v999_v30 = vrot.slane %v849_v13, 1 }
 0x359   :  { %v749_v41 = vadd.f32 %v748_v38, %v3117_v55 }
 0x35a   :  { %v821_v44 = vadd.f32 %v747_v37, %v679_v36 }
 0x35b   :  { %v831_v45 = vadd.f32 %v829_v27, %v749_v41 }
 0x35c   :  { %v1718_v32 = vmul.f32 -1.442695, %v821_v44 }
 0x35d   :  { %v1719_v46 = vmul.f32 -1.442695, %v831_v45 }
 0x35e   :  { %2731 = vpow2.f32 %v1718_v32 }
 0x35f   :  { %2733 = vpow2.f32 %v1719_v46  ;;  %v1009_v46 = vrot.slane %v849_v13, 2 }
 0x368   :  { %v2732_v47 = vpop.eup %2731 }
 0x369   :  { %v825_v48 = vadd.f32 1.0, %v2732_v47  ;;  %v2734_v50 = vpop.eup %2733 }
 0x36a   :  { %v835_v53 = vadd.f32 1.0, %v2734_v50 }
 0x36b   :  { %2735 = vrcp.f32 %v825_v48 }
 0x36c   :  { %2737 = vrcp.f32 %v835_v53 }
 0x375   :  { %v2736_v57 = vpop.eup %2735 }
 0x376   :  { %v838_v59 = vmul.f32 %v2736_v57, %v818_v56  ;;  %v2738_v2 = vpop.eup %2737 }
 0x377   :  { %v843_v3 = vsub.f32 1.0, %v2738_v2  ;;  %v845_v9 = vmul.f32 %v2738_v2, %v3169_v29  ;;  %v1019_v2 = vld [vmem:[#allocation2 + $0x4] ss:$8 sm:$0x7] }
 0x378   :  { %v841_v63 = vadd.f32 %v839_v62, %v838_v59 }
 0x37a   :  { %2739 = vtanh.f32 %v841_v63 }
 0x384   :  { %v2740_v4 = vpop.eup %2739 }
 0x385   :  { %v844_v6 = vmul.f32 %v2740_v4, %v843_v3 }
 0x387   :  { %v3213_v10 = vadd.f32 %v845_v9, %v844_v6 }
 0x389   :  { %847 = vst [vmem:[#allocation9 + $0x2] sm:$0x1] %v3213_v10  ;;  %915 = vmatmul.mubr.f32.vlgmr.msra.gmra.mrb[8].mxu0 %v3213_v10  ;;  %2056 = vmatmul.mubr.f32.vlgmr.msra.gmra.mrb[8].mxu1 %v3213_v10 }
 0x38a   :  { %2481 = vmatpush1.bf16.msra.mxu0 %v2984_v22  ;;  %2512 = vmatpush3.bf16.msra.mxu1 %v2986_v24 }
 0x38b   :  { %2483 = vmatprep.subr.bf16.mxu0 %v2989_v25  ;;  %2513 = vmatprep.subr.bf16.mxu1 %v2890_v0 }
 0x38c   :  { %1084 = vmatprep.mubr.f32.mxu0 %v2891_v1  ;;  %2090 = vmatprep.mubr.msk.f32.mxu1 %vm2892_vm0, %v2891_v1 }
 0x38e   :  { %2485 = vmatpush1.bf16.msra.mxu0 %v2993_v31  ;;  %2515 = vmatpush3.bf16.msra.mxu1 %v2996_v33 }
 0x38f   :  { %2487 = vmatprep.subr.bf16.mxu0 %v2999_v34  ;;  %2516 = vmatprep.subr.bf16.mxu1 %v2890_v0 }
 0x392   :  { %2489 = vmatpush1.bf16.msra.mxu0 %v3006_v40  ;;  %2518 = vmatpush3.bf16.msra.mxu1 %v3009_v42 }
 0x393   :  { %2491 = vmatprep.subr.bf16.mxu0 %v3012_v43  ;;  %2519 = vmatprep.subr.bf16.mxu1 %v2890_v0 }
 0x396   :  { %2493 = vmatpush1.bf16.msra.mxu0 %v3016_v49  ;;  %2521 = vmatpush3.bf16.msra.mxu1 %v3019_v51 }
 0x397   :  { %2495 = vmatprep.subr.bf16.mxu0 %v3022_v52  ;;  %2522 = vmatprep.subr.bf16.mxu1 %v2890_v0 }
 0x39a   :  { %2497 = vmatpush1.bf16.msra.mxu0 %v3026_v58  ;;  %2524 = vmatpush3.bf16.msra.mxu1 %v3029_v60 }
 0x39b   :  { %2499 = vmatprep.subr.bf16.mxu0 %v3032_v61  ;;  %2525 = vmatprep.subr.bf16.mxu1 %v2890_v0 }
 0x39e   :  { %2501 = vmatpush1.bf16.msra.mxu0 %v3036_v5  ;;  %2527 = vmatpush3.bf16.msra.mxu1 %v3039_v7 }
 0x39f   :  { %2503 = vmatprep.subr.bf16.mxu0 %v3042_v8  ;;  %2528 = vmatprep.subr.bf16.mxu1 %v2890_v0 }
 0x3a2   :  { %2505 = vmatpush1.bf16.msra.mxu0 %v3046_v14  ;;  %2530 = vmatpush3.bf16.msra.mxu1 %v3049_v17 }
 0x3a3   :  { %2507 = vmatprep.subr.bf16.mxu0 %v3052_v18  ;;  %2531 = vmatprep.subr.bf16.mxu1 %v2890_v0 }
 0x3a6   :  { %2509 = vmatpush1.bf16.msra.mxu0 %v3056_v23  ;;  %2533 = vmatpush3.bf16.msra.mxu1 %v3059_v26 }
 0x3a7   :  { %2535 = vmatprep.subr.bf16.mxu0 %v2982_v15  ;;  %2566 = vmatprep.subr.bf16.mxu1 %v2890_v0 }
 0x45c   :  { %v916_v11 = vpop.f32.mrb[8].mxu0  ;;  %v987_v12 = vpop.f32.mrb[8].mxu1 }
 0x45d   :  { %v917_v19 = vadd.f32 %v916_v11, %v3115_v54  ;;  %v918_v20 = vpop.f32.mrb[9].mxu0  ;;  %v2057_v21 = vpop.f32.mrb[9].mxu1  ;;  %v988_v27 = vadd.f32 %v987_v12, %v3121_v16  ;;  %v1169_v11 = vrot.slane %v1019_v2, 1 }
 0x45e   :  { %v919_v28 = vadd.f32 %v918_v20, %v3117_v55 }
 0x45f   :  { %v991_v29 = vadd.f32 %v917_v19, %v849_v13 }
 0x460   :  { %v1001_v36 = vadd.f32 %v999_v30, %v919_v28 }
 0x461   :  { %v1720_v35 = vmul.f32 -1.442695, %v991_v29 }
 0x462   :  { %v1721_v37 = vmul.f32 -1.442695, %v1001_v36 }
 0x463   :  { %2741 = vpow2.f32 %v1720_v35 }
 0x464   :  { %2743 = vpow2.f32 %v1721_v37  ;;  %v1179_v37 = vrot.slane %v1019_v2, 2 }
 0x46d   :  { %v2742_v38 = vpop.eup %2741 }
 0x46e   :  { %v995_v39 = vadd.f32 1.0, %v2742_v38  ;;  %v2744_v41 = vpop.eup %2743 }
 0x46f   :  { %v1005_v44 = vadd.f32 1.0, %v2744_v41 }
 0x470   :  { %2745 = vrcp.f32 %v995_v39 }
 0x471   :  { %2747 = vrcp.f32 %v1005_v44 }
 0x47a   :  { %v2746_v32 = vpop.eup %2745 }
 0x47b   :  { %v1008_v45 = vmul.f32 %v2746_v32, %v988_v27  ;;  %v2748_v48 = vpop.eup %2747 }
 0x47c   :  { %v1013_v50 = vsub.f32 1.0, %v2748_v48  ;;  %v1015_v57 = vmul.f32 %v2748_v48, %v3213_v10  ;;  %v1189_v48 = vld [vmem:[#allocation2 + $0x5] ss:$8 sm:$0x7] }
 0x47d   :  { %v1011_v47 = vadd.f32 %v1009_v46, %v1008_v45 }
 0x47f   :  { %2749 = vtanh.f32 %v1011_v47 }
 0x489   :  { %v2750_v53 = vpop.eup %2749 }
 0x48a   :  { %v1014_v56 = vmul.f32 %v2750_v53, %v1013_v50 }
 0x48c   :  { %v3257_v59 = vadd.f32 %v1015_v57, %v1014_v56 }
 0x48e   :  { %1017 = vst [vmem:[#allocation9 + $0x3] sm:$0x1] %v3257_v59  ;;  %1085 = vmatmul.mubr.f32.vlgmr.msra.gmra.mrb[10].mxu0 %v3257_v59  ;;  %2091 = vmatmul.mubr.f32.vlgmr.msra.gmra.mrb[10].mxu1 %v3257_v59 }
 0x48f   :  { %2537 = vmatpush1.bf16.msra.mxu0 %v2984_v22  ;;  %2568 = vmatpush3.bf16.msra.mxu1 %v2986_v24 }
 0x490   :  { %2539 = vmatprep.subr.bf16.mxu0 %v2989_v25  ;;  %2569 = vmatprep.subr.bf16.mxu1 %v2890_v0 }
 0x491   :  { %1254 = vmatprep.mubr.f32.mxu0 %v2891_v1  ;;  %2125 = vmatprep.mubr.msk.f32.mxu1 %vm2892_vm0, %v2891_v1 }
 0x493   :  { %2541 = vmatpush1.bf16.msra.mxu0 %v2993_v31  ;;  %2571 = vmatpush3.bf16.msra.mxu1 %v2996_v33 }
 0x494   :  { %2543 = vmatprep.subr.bf16.mxu0 %v2999_v34  ;;  %2572 = vmatprep.subr.bf16.mxu1 %v2890_v0 }
 0x497   :  { %2545 = vmatpush1.bf16.msra.mxu0 %v3006_v40  ;;  %2574 = vmatpush3.bf16.msra.mxu1 %v3009_v42 }
 0x498   :  { %2547 = vmatprep.subr.bf16.mxu0 %v3012_v43  ;;  %2575 = vmatprep.subr.bf16.mxu1 %v2890_v0 }
 0x49b   :  { %2549 = vmatpush1.bf16.msra.mxu0 %v3016_v49  ;;  %2577 = vmatpush3.bf16.msra.mxu1 %v3019_v51 }
 0x49c   :  { %2551 = vmatprep.subr.bf16.mxu0 %v3022_v52  ;;  %2578 = vmatprep.subr.bf16.mxu1 %v2890_v0 }
 0x49f   :  { %2553 = vmatpush1.bf16.msra.mxu0 %v3026_v58  ;;  %2580 = vmatpush3.bf16.msra.mxu1 %v3029_v60 }
 0x4a0   :  { %2555 = vmatprep.subr.bf16.mxu0 %v3032_v61  ;;  %2581 = vmatprep.subr.bf16.mxu1 %v2890_v0 }
 0x4a3   :  { %2557 = vmatpush1.bf16.msra.mxu0 %v3036_v5  ;;  %2583 = vmatpush3.bf16.msra.mxu1 %v3039_v7 }
 0x4a4   :  { %2559 = vmatprep.subr.bf16.mxu0 %v3042_v8  ;;  %2584 = vmatprep.subr.bf16.mxu1 %v2890_v0 }
 0x4a7   :  { %2561 = vmatpush1.bf16.msra.mxu0 %v3046_v14  ;;  %2586 = vmatpush3.bf16.msra.mxu1 %v3049_v17 }
 0x4a8   :  { %2563 = vmatprep.subr.bf16.mxu0 %v3052_v18  ;;  %2587 = vmatprep.subr.bf16.mxu1 %v2890_v0 }
 0x4ab   :  { %2565 = vmatpush1.bf16.msra.mxu0 %v3056_v23  ;;  %2589 = vmatpush3.bf16.msra.mxu1 %v3059_v26 }
 0x4ac   :  { %2591 = vmatprep.subr.bf16.mxu0 %v2982_v15  ;;  %2622 = vmatprep.subr.bf16.mxu1 %v2890_v0 }
 0x561   :  { %v1086_v62 = vpop.f32.mrb[10].mxu0  ;;  %v1157_v63 = vpop.f32.mrb[10].mxu1 }
 0x562   :  { %v1087_v3 = vadd.f32 %v1086_v62, %v3115_v54  ;;  %v1088_v4 = vpop.f32.mrb[11].mxu0  ;;  %v2092_v6 = vpop.f32.mrb[11].mxu1  ;;  %v1158_v30 = vadd.f32 %v1157_v63, %v3121_v16  ;;  %v1339_v62 = vrot.slane %v1189_v48, 1 }
 0x563   :  { %v1089_v9 = vadd.f32 %v1088_v4, %v3117_v55 }
 0x564   :  { %v1161_v10 = vadd.f32 %v1087_v3, %v1019_v2 }
 0x565   :  { %v1171_v13 = vadd.f32 %v1169_v11, %v1089_v9 }
 0x566   :  { %v1722_v12 = vmul.f32 -1.442695, %v1161_v10 }
 0x567   :  { %v1723_v19 = vmul.f32 -1.442695, %v1171_v13  ;;  %v1349_v13 = vrot.slane %v1189_v48, 2 }
 0x568   :  { %2751 = vpow2.f32 %v1722_v12 }
 0x569   :  { %2753 = vpow2.f32 %v1723_v19 }
 0x572   :  { %v2752_v20 = vpop.eup %2751 }
 0x573   :  { %v1165_v21 = vadd.f32 1.0, %v2752_v20  ;;  %v2754_v28 = vpop.eup %2753 }
 0x574   :  { %v1175_v29 = vadd.f32 1.0, %v2754_v28 }
 0x575   :  { %2755 = vrcp.f32 %v1165_v21 }
 0x576   :  { %2757 = vrcp.f32 %v1175_v29 }
 0x57f   :  { %v2756_v35 = vpop.eup %2755 }
 0x580   :  { %v1178_v36 = vmul.f32 %v2756_v35, %v1158_v30  ;;  %v2758_v39 = vpop.eup %2757 }
 0x581   :  { %v1183_v41 = vsub.f32 1.0, %v2758_v39  ;;  %v1185_v32 = vmul.f32 %v2758_v39, %v3257_v59 }
 0x582   :  { %v1181_v38 = vadd.f32 %v1179_v37, %v1178_v36 }
 0x584   :  { %2759 = vtanh.f32 %v1181_v38 }
 0x58e   :  { %v2760_v44 = vpop.eup %2759 }
 0x58f   :  { %v1184_v27 = vmul.f32 %v2760_v44, %v1183_v41  ;;  %v1529_v41 = vld [vmem:[#allocation2 + $0x7] ss:$8 sm:$0x7] }
 0x591   :  { %v3301_v45 = vadd.f32 %v1185_v32, %v1184_v27 }
 0x593   :  { %1187 = vst [vmem:[#allocation9 + $0x4] sm:$0x1] %v3301_v45  ;;  %1255 = vmatmul.mubr.f32.vlgmr.msra.gmra.mrb[12].mxu0 %v3301_v45  ;;  %2126 = vmatmul.mubr.f32.vlgmr.msra.gmra.mrb[12].mxu1 %v3301_v45 }
 0x594   :  { %2593 = vmatpush1.bf16.msra.mxu0 %v2984_v22  ;;  %2624 = vmatpush3.bf16.msra.mxu1 %v2986_v24 }
 0x595   :  { %2595 = vmatprep.subr.bf16.mxu0 %v2989_v25  ;;  %2625 = vmatprep.subr.bf16.mxu1 %v2890_v0 }
 0x596   :  { %1424 = vmatprep.mubr.f32.mxu0 %v2891_v1  ;;  %2160 = vmatprep.mubr.msk.f32.mxu1 %vm2892_vm0, %v2891_v1 }
 0x598   :  { %2597 = vmatpush1.bf16.msra.mxu0 %v2993_v31  ;;  %2627 = vmatpush3.bf16.msra.mxu1 %v2996_v33 }
 0x599   :  { %2599 = vmatprep.subr.bf16.mxu0 %v2999_v34  ;;  %2628 = vmatprep.subr.bf16.mxu1 %v2890_v0 }
 0x59c   :  { %2601 = vmatpush1.bf16.msra.mxu0 %v3006_v40  ;;  %2630 = vmatpush3.bf16.msra.mxu1 %v3009_v42 }
 0x59d   :  { %2603 = vmatprep.subr.bf16.mxu0 %v3012_v43  ;;  %2631 = vmatprep.subr.bf16.mxu1 %v2890_v0 }
 0x5a0   :  { %2605 = vmatpush1.bf16.msra.mxu0 %v3016_v49  ;;  %2633 = vmatpush3.bf16.msra.mxu1 %v3019_v51 }
 0x5a1   :  { %2607 = vmatprep.subr.bf16.mxu0 %v3022_v52  ;;  %2634 = vmatprep.subr.bf16.mxu1 %v2890_v0 }
 0x5a4   :  { %2609 = vmatpush1.bf16.msra.mxu0 %v3026_v58  ;;  %2636 = vmatpush3.bf16.msra.mxu1 %v3029_v60 }
 0x5a5   :  { %2611 = vmatprep.subr.bf16.mxu0 %v3032_v61  ;;  %2637 = vmatprep.subr.bf16.mxu1 %v2890_v0 }
 0x5a8   :  { %2613 = vmatpush1.bf16.msra.mxu0 %v3036_v5  ;;  %2639 = vmatpush3.bf16.msra.mxu1 %v3039_v7 }
 0x5a9   :  { %2615 = vmatprep.subr.bf16.mxu0 %v3042_v8  ;;  %2640 = vmatprep.subr.bf16.mxu1 %v2890_v0 }
 0x5ac   :  { %2617 = vmatpush1.bf16.msra.mxu0 %v3046_v14  ;;  %2642 = vmatpush3.bf16.msra.mxu1 %v3049_v17 }
 0x5ad   :  { %2619 = vmatprep.subr.bf16.mxu0 %v3052_v18  ;;  %2643 = vmatprep.subr.bf16.mxu1 %v2890_v0 }
 0x5b0   :  { %2621 = vmatpush1.bf16.msra.mxu0 %v3056_v23  ;;  %2645 = vmatpush3.bf16.msra.mxu1 %v3059_v26 }
 0x5b1   :  { %2647 = vmatprep.subr.bf16.mxu0 %v2982_v15  ;;  %2678 = vmatprep.subr.bf16.mxu1 %v2890_v0 }
 0x666   :  { %v1256_v46 = vpop.f32.mrb[12].mxu0  ;;  %v1327_v47 = vpop.f32.mrb[12].mxu1 }
 0x667   :  { %v1257_v50 = vadd.f32 %v1256_v46, %v3115_v54  ;;  %v1258_v53 = vpop.f32.mrb[13].mxu0  ;;  %v2127_v56 = vpop.f32.mrb[13].mxu1  ;;  %v1328_v10 = vadd.f32 %v1327_v47, %v3121_v16  ;;  %v1679_v47 = vrot.slane %v1529_v41, 1 }
 0x668   :  { %v1259_v57 = vadd.f32 %v1258_v53, %v3117_v55 }
 0x669   :  { %v1331_v59 = vadd.f32 %v1257_v50, %v1189_v48 }
 0x66a   :  { %v1341_v2 = vadd.f32 %v1339_v62, %v1259_v57 }
 0x66b   :  { %v1724_v63 = vmul.f32 -1.442695, %v1331_v59 }
 0x66c   :  { %v1725_v3 = vmul.f32 -1.442695, %v1341_v2 }
 0x66d   :  { %2761 = vpow2.f32 %v1724_v63 }
 0x66e   :  { %2763 = vpow2.f32 %v1725_v3  ;;  %v1689_v3 = vrot.slane %v1529_v41, 2 }
 0x677   :  { %v2762_v4 = vpop.eup %2761 }
 0x678   :  { %v1335_v15 = vadd.f32 1.0, %v2762_v4  ;;  %v2764_v6 = vpop.eup %2763 }
 0x679   :  { %v1345_v9 = vadd.f32 1.0, %v2764_v6 }
 0x67a   :  { %2765 = vrcp.f32 %v1335_v15 }
 0x67b   :  { %2767 = vrcp.f32 %v1345_v9 }
 0x684   :  { %v2766_v11 = vpop.eup %2765 }
 0x685   :  { %v1348_v12 = vmul.f32 %v2766_v11, %v1328_v10  ;;  %v2768_v20 = vpop.eup %2767 }
 0x686   :  { %v1353_v21 = vsub.f32 1.0, %v2768_v20  ;;  %v1355_v30 = vmul.f32 %v2768_v20, %v3301_v45 }
 0x687   :  { %v1351_v19 = vadd.f32 %v1349_v13, %v1348_v12 }
 0x689   :  { %2769 = vtanh.f32 %v1351_v19 }
 0x693   :  { %v2770_v28 = vpop.eup %2769 }
 0x694   :  { %v1354_v29 = vmul.f32 %v2770_v28, %v1353_v21 }
 0x696   :  { %v3345_v35 = vadd.f32 %v1355_v30, %v1354_v29 }
 0x698   :  { %1357 = vst [vmem:[#allocation9 + $0x5] sm:$0x1] %v3345_v35  ;;  %1425 = vmatmul.mubr.f32.vlgmr.msra.gmra.mrb[14].mxu0 %v3345_v35  ;;  %2161 = vmatmul.mubr.f32.vlgmr.msra.gmra.mrb[14].mxu1 %v3345_v35 }
 0x699   :  { %2649 = vmatpush1.bf16.msra.mxu0 %v2984_v22  ;;  %2680 = vmatpush3.bf16.msra.mxu1 %v2986_v24  ;;  %v1359_v24 = vld [vmem:[#allocation2 + $0x6] ss:$8 sm:$0x7] }
 0x69a   :  { %2651 = vmatprep.subr.bf16.mxu0 %v2989_v25  ;;  %2681 = vmatprep.subr.bf16.mxu1 %v2890_v0 }
 0x69b   :  { %1594 = vmatprep.mubr.f32.mxu0 %v2891_v1  ;;  %2195 = vmatprep.mubr.msk.f32.mxu1 %vm2892_vm0, %v2891_v1 }
 0x69d   :  { %2653 = vmatpush1.bf16.msra.mxu0 %v2993_v31  ;;  %2683 = vmatpush3.bf16.msra.mxu1 %v2996_v33 }
 0x69e   :  { %2655 = vmatprep.subr.bf16.mxu0 %v2999_v34  ;;  %2684 = vmatprep.subr.bf16.mxu1 %v2890_v0 }
 0x6a1   :  { %2657 = vmatpush1.bf16.msra.mxu0 %v3006_v40  ;;  %2686 = vmatpush3.bf16.msra.mxu1 %v3009_v42  ;;  %v1509_v42 = vrot.slane %v1359_v24, 1 }
 0x6a2   :  { %2659 = vmatprep.subr.bf16.mxu0 %v3012_v43  ;;  %2687 = vmatprep.subr.bf16.mxu1 %v2890_v0 }
 0x6a5   :  { %2661 = vmatpush1.bf16.msra.mxu0 %v3016_v49  ;;  %2689 = vmatpush3.bf16.msra.mxu1 %v3019_v51 }
 0x6a6   :  { %2663 = vmatprep.subr.bf16.mxu0 %v3022_v52  ;;  %2690 = vmatprep.subr.bf16.mxu1 %v2890_v0 }
 0x6a9   :  { %2665 = vmatpush1.bf16.msra.mxu0 %v3026_v58  ;;  %2692 = vmatpush3.bf16.msra.mxu1 %v3029_v60 }
 0x6aa   :  { %2667 = vmatprep.subr.bf16.mxu0 %v3032_v61  ;;  %2693 = vmatprep.subr.bf16.mxu1 %v2890_v0 }
 0x6ad   :  { %2669 = vmatpush1.bf16.msra.mxu0 %v3036_v5  ;;  %2695 = vmatpush3.bf16.msra.mxu1 %v3039_v7 }
 0x6ae   :  { %2671 = vmatprep.subr.bf16.mxu0 %v3042_v8  ;;  %2696 = vmatprep.subr.bf16.mxu1 %v2890_v0  ;;  %v1519_v8 = vrot.slane %v1359_v24, 2 }
 0x6b1   :  { %2673 = vmatpush1.bf16.msra.mxu0 %v3046_v14  ;;  %2698 = vmatpush3.bf16.msra.mxu1 %v3049_v17 }
 0x6b2   :  { %2675 = vmatprep.subr.bf16.mxu0 %v3052_v18  ;;  %2699 = vmatprep.subr.bf16.mxu1 %v2890_v0 }
 0x6b5   :  { %2677 = vmatpush1.bf16.msra.mxu0 %v3056_v23  ;;  %2701 = vmatpush3.bf16.msra.mxu1 %v3059_v26 }
 0x76b   :  { %v1426_v1 = vpop.f32.mrb[14].mxu0  ;;  %v1497_v22 = vpop.f32.mrb[14].mxu1 }
 0x76c   :  { %v1427_v25 = vadd.f32 %v1426_v1, %v3115_v54  ;;  %v1428_v31 = vpop.f32.mrb[15].mxu0  ;;  %v2162_v33 = vpop.f32.mrb[15].mxu1  ;;  %v1498_v61 = vadd.f32 %v1497_v22, %v3121_v16 }
 0x76d   :  { %v1429_v34 = vadd.f32 %v1428_v31, %v3117_v55 }
 0x76e   :  { %v1501_v40 = vadd.f32 %v1427_v25, %v1359_v24 }
 0x76f   :  { %v1511_v49 = vadd.f32 %v1509_v42, %v1429_v34 }
 0x770   :  { %v1726_v43 = vmul.f32 -1.442695, %v1501_v40 }
 0x771   :  { %v1727_v51 = vmul.f32 -1.442695, %v1511_v49 }
 0x772   :  { %2771 = vpow2.f32 %v1726_v43 }
 0x773   :  { %2773 = vpow2.f32 %v1727_v51 }
 0x77c   :  { %v2772_v0 = vpop.eup %2771 }
 0x77d   :  { %v1505_v52 = vadd.f32 1.0, %v2772_v0  ;;  %v2774_v58 = vpop.eup %2773 }
 0x77e   :  { %v1515_v60 = vadd.f32 1.0, %v2774_v58 }
 0x77f   :  { %2775 = vrcp.f32 %v1505_v52 }
 0x780   :  { %2777 = vrcp.f32 %v1515_v60 }
 0x789   :  { %v2776_v5 = vpop.eup %2775 }
 0x78a   :  { %v1518_v7 = vmul.f32 %v2776_v5, %v1498_v61  ;;  %v2778_v17 = vpop.eup %2777 }
 0x78b   :  { %v1523_v18 = vsub.f32 1.0, %v2778_v17  ;;  %v1525_v36 = vmul.f32 %v2778_v17, %v3345_v35 }
 0x78c   :  { %v1521_v14 = vadd.f32 %v1519_v8, %v1518_v7 }
 0x78e   :  { %2779 = vtanh.f32 %v1521_v14 }
 0x798   :  { %v2780_v23 = vpop.eup %2779 }
 0x799   :  { %v1524_v26 = vmul.f32 %v2780_v23, %v1523_v18 }
 0x79b   :  { %v1526_v37 = vadd.f32 %v1525_v36, %v1524_v26 }
 0x79d   :  { %1527 = vst [vmem:[#allocation9 + $0x6] sm:$0x1] %v1526_v37  ;;  %1595 = vmatmul.mubr.f32.vlgmr.msra.gmra.mrb[16].mxu0 %v1526_v37  ;;  %2196 = vmatmul.mubr.f32.vlgmr.msra.gmra.mrb[16].mxu1 %v1526_v37 }
 0x870   :  { %v1596_v38 = vpop.f32.mrb[16].mxu0  ;;  %v1667_v39 = vpop.f32.mrb[16].mxu1 }
 0x871   :  { %v1597_v44 = vadd.f32 %v1596_v38, %v3115_v54  ;;  %v1598_v27 = vpop.f32.mrb[17].mxu0  ;;  %v2197_v32 = vpop.f32.mrb[17].mxu1  ;;  %v1668_v63 = vadd.f32 %v1667_v39, %v3121_v16 }
 0x872   :  { %v1599_v45 = vadd.f32 %v1598_v27, %v3117_v55 }
 0x873   :  { %v1671_v46 = vadd.f32 %v1597_v44, %v1529_v41 }
 0x874   :  { %v1681_v50 = vadd.f32 %v1679_v47, %v1599_v45 }
 0x875   :  { %v1728_v48 = vmul.f32 -1.442695, %v1671_v46 }
 0x876   :  { %v1729_v53 = vmul.f32 -1.442695, %v1681_v50 }
 0x877   :  { %2781 = vpow2.f32 %v1728_v48 }
 0x878   :  { %2783 = vpow2.f32 %v1729_v53 }
 0x881   :  { %v2782_v56 = vpop.eup %2781 }
 0x882   :  { %v1675_v57 = vadd.f32 1.0, %v2782_v56  ;;  %v2784_v59 = vpop.eup %2783 }
 0x883   :  { %v1685_v62 = vadd.f32 1.0, %v2784_v59 }
 0x884   :  { %2785 = vrcp.f32 %v1675_v57 }
 0x885   :  { %2787 = vrcp.f32 %v1685_v62 }
 0x88e   :  { %v2786_v2 = vpop.eup %2785 }
 0x88f   :  { %v1688_v54 = vmul.f32 %v2786_v2, %v1668_v63  ;;  %v2788_v55 = vpop.eup %2787 }
 0x890   :  { %v1693_v15 = vsub.f32 1.0, %v2788_v55  ;;  %v1695_v10 = vmul.f32 %v2788_v55, %v1526_v37 }
 0x891   :  { %v1691_v4 = vadd.f32 %v1689_v3, %v1688_v54 }
 0x893   :  { %2789 = vtanh.f32 %v1691_v4 }
 0x89d   :  { %v2790_v6 = vpop.eup %2789 }
 0x89e   :  { %v1694_v9 = vmul.f32 %v2790_v6, %v1693_v15 }
 0x8a0   :  { %v1696_v11 = vadd.f32 %v1695_v10, %v1694_v9 }
 0x8a2   :  { %1697 = vst [vmem:[#allocation9 + $0x7] sm:$0x1] %v1696_v11 }
 0x8a3   :  { %2868 = shalt.err (!%p2865_p0)
}
 0x8a4   :  { %s2869_s16 = scalar_lea.hbm %s3408_s6, 128 }
 0x8a5   :  { %p2870_p1 = scmp.ne.s32.totalorder %s3408_s6, %s2869_s16  ;;  %p2873_p2 = scmp.lt.u32.totalorder %s2869_s16, %s3408_s6 }
 0x8a7   :  { %p2875_p3 = pnand %p2873_p2, %p2870_p1 }
 0x8a9   :  { %2878 = shalt.err (!%p2875_p3)
}
 0x8aa   :  { %1707 = dma.vmem_to_hbm [thread:$0]  %s1705_s5, 128, %s3408_s6, [#allocation5]  }
 0x8ab   :  { %2883 = dma.done.wait [#allocation5], 128  }
 0x8ac   :  { %2884 = vsyncadd [#allocation5], 4294967168 }
 0x8ad   :  { %1711 = vsyncpa [#allocation4], 1 }
 0x8ae   :  { %1712 = vsyncpa [#allocation7], 1 }
 0x8af   :  { %1713 = vsyncpa [#allocation5], 1 }

</bundles_post_ra>
